<compile_context>
chip_gen: v6e
topology: v6e:2x2x1
jax: 0.10.0
libtpu: 0.0.40
codegen_flags: <defaults>
</compile_context>

<pallas_src>
import functools

import jax
import jax.numpy as jnp
from jax.experimental import pallas as pl
from jax.experimental.pallas import tpu as pltpu


def _round_up(x, m):
    return ((x + m - 1) // m) * m


def _vmem_limit_bytes():
    """Scoped-VMEM limit to request, derived from physical capacity."""
    try:
        cap = int(pltpu.get_tpu_info().vmem_capacity_bytes)
    except Exception:
        cap = 64 * 1024 * 1024          # conservative fallback (v7x per-TC VMEM)
    return max(32 * 1024 * 1024, min(int(cap * 0.9), 100 * 1024 * 1024))


def _tile_vmem_bytes(t, n_e, e_dim):
    """Rough per-step VMEM footprint (double-buffered IO + live temporaries)."""
    f32 = 4
    dbl = 2                                    # double buffering
    io = dbl * t * e_dim * f32                 # z in
    io += dbl * t * e_dim * f32                # z_q out
    io += dbl * t * n_e * f32                  # one-hot encodings out
    io += dbl * t * f32                        # indices out
    io += dbl * (128 + n_e) * f32              # partial sse / count out
    io += dbl * (n_e * e_dim + n_e) * f32      # codebook + e2 (constant blocks)
    live = 4 * t * n_e * f32                   # dist / iota / onehot / temps
    live += 4 * t * e_dim * f32
    return io + live


def _pick_tile_n(n, n_e, e_dim, budget_bytes):
    best = 8
    for t in (8, 16, 32, 64, 128, 256, 512, 1024):
        if _tile_vmem_bytes(t, n_e, e_dim) <= budget_bytes:
            best = t
    # No point in a tile much larger than the (lane-padded) problem itself.
    return min(best, max(8, _round_up(n, 128)))


def _vq_kernel(z_ref, emb_ref, e2_ref,
               zq_ref, enc_ref, idx_ref, sse_ref, cnt_ref,
               *, total_n, tile_n, use_bf16_matmul):
    z = z_ref[...].astype(jnp.float32)                 # (T, D)
    e = emb_ref[...].astype(jnp.float32)               # (K, D)
    e2 = e2_ref[...]                                    # (1, K) hoisted norms
    t = z.shape[0]
    k = e.shape[0]

    z2 = jnp.sum(z * z, axis=1, keepdims=True)          # (T, 1)

    if use_bf16_matmul:
        zd, ed = z.astype(jnp.bfloat16), e.astype(jnp.bfloat16)
    else:
        zd, ed = z, e
    # z @ e^T without an in-kernel transpose: contract the last dim of both.
    ze = jax.lax.dot_general(
        zd, ed, dimension_numbers=(((1,), (1,)), ((), ())),
        preferred_element_type=jnp.float32)              # (T, K)
    dist = z2 + e2 - 2.0 * ze

    # First minimal index (torch.argmin semantics).
    col = jax.lax.broadcasted_iota(jnp.int32, (t, k), 1)
    dmin = jnp.min(dist, axis=1, keepdims=True)
    idx = jnp.min(jnp.where(dist == dmin, col, k), axis=1)        # (T,)
    onehot = (col == idx[:, None]).astype(jnp.float32)             # (T, K)

    # z_q = onehot @ embedding  (same as torch.matmul(min_encodings, weight))
    zq = jnp.dot(onehot, e, preferred_element_type=jnp.float32)    # (T, D)

    zq_ref[...] = zq.astype(zq_ref.dtype)
    enc_ref[...] = onehot.astype(enc_ref.dtype)
    idx_ref[...] = idx[:, None].astype(jnp.int32)

    # Per-tile partial reductions (padded rows masked out).  The tiny final
    # scalar reductions happen in the JAX wrapper so the grid stays parallel
    # (megacore-shardable on v7x, no carried scratch state).
    row = pl.program_id(0) * tile_n + jax.lax.broadcasted_iota(
        jnp.int32, (t, 1), 0)
    valid = (row < total_n).astype(jnp.float32)                    # (T, 1)
    diff = (zq - z) * valid
    sse_ref[0, :, :] = jnp.full((1, 128), jnp.sum(diff * diff), jnp.float32)
    cnt_ref[0, :, :] = jnp.sum(onehot * valid, axis=0, keepdims=True)


def vector_quantizer_forward(z, embedding, beta, al, istrain=True,
                             tile_n=None, use_bf16_matmul=False):
    """Pallas implementation of VectorQuantizer.forward.

    z:         (..., e_dim) float array
    embedding: (n_e, e_dim) float codebook
    Returns (loss, z_q, perplexity, min_encodings, min_encoding_indices) when
    istrain=True, else (min_encoding_indices, z_q), matching the PyTorch module.
    """
    # TODO(synk): forward-only; training would need a jax.custom_vjp for the
    # straight-through estimator z + sg(z_q - z) and the sg[] terms in the loss.
    z = jnp.asarray(z, jnp.float32)
    embedding = jnp.asarray(embedding, jnp.float32)
    n_e, e_dim = embedding.shape
    z_flat = z.reshape(-1, e_dim)
    n = z_flat.shape[0]

    vmem_limit = _vmem_limit_bytes()
    if tile_n is None:
        tile_n = _pick_tile_n(n, n_e, e_dim, budget_bytes=vmem_limit // 2)
    tile_n = max(8, _round_up(int(tile_n), 8))

    num_tiles = (n + tile_n - 1) // tile_n
    n_pad = num_tiles * tile_n
    if n_pad != n:
        z_flat_in = jnp.pad(z_flat, ((0, n_pad - n), (0, 0)))
    else:
        z_flat_in = z_flat

    # Codebook squared norms, computed once outside the kernel.
    e2 = jnp.sum(embedding * embedding, axis=1)[None, :]            # (1, n_e)

    kernel = functools.partial(
        _vq_kernel, total_n=n, tile_n=tile_n,
        use_bf16_matmul=bool(use_bf16_matmul))

    out_shapes = (
        jax.ShapeDtypeStruct((n_pad, e_dim), jnp.float32),           # z_q
        jax.ShapeDtypeStruct((n_pad, n_e), jnp.float32),             # min_encodings
        jax.ShapeDtypeStruct((n_pad, 1), jnp.int32),                 # indices
        jax.ShapeDtypeStruct((num_tiles, 1, 128), jnp.float32),      # partial SSE
        jax.ShapeDtypeStruct((num_tiles, 1, n_e), jnp.float32),      # partial counts
    )

    cost = pl.CostEstimate(
        flops=int(4 * n_pad * n_e * e_dim),
        transcendentals=0,
        bytes_accessed=int(4 * (2 * n_pad * e_dim + n_pad * n_e + n_pad
                                + n_e * e_dim + n_e)),
    )

    zq_p, enc_p, idx_p, sse_part, cnt_part = pl.pallas_call(
        kernel,
        out_shape=out_shapes,
        grid_spec=pltpu.PrefetchScalarGridSpec(
            num_scalar_prefetch=0,
            grid=(num_tiles,),
            in_specs=[
                pl.BlockSpec((tile_n, e_dim), lambda i: (i, 0)),     # z tile
                pl.BlockSpec((n_e, e_dim), lambda i: (0, 0)),        # codebook
                pl.BlockSpec((1, n_e), lambda i: (0, 0)),            # codebook norms
            ],
            out_specs=[
                pl.BlockSpec((tile_n, e_dim), lambda i: (i, 0)),
                pl.BlockSpec((tile_n, n_e), lambda i: (i, 0)),
                pl.BlockSpec((tile_n, 1), lambda i: (i, 0)),
                pl.BlockSpec((1, 1, 128), lambda i: (i, 0, 0)),
                pl.BlockSpec((1, 1, n_e), lambda i: (i, 0, 0)),
            ],
        ),
        compiler_params=pltpu.CompilerParams(
            dimension_semantics=("parallel",),
            vmem_limit_bytes=vmem_limit),
        cost_estimate=cost,
    )(z_flat_in, embedding, e2)

    z_q = zq_p[:n].reshape(z.shape)
    min_idx = idx_p[:n]
    if not istrain:
        return min_idx, z_q

    min_encodings = enc_p[:n]
    sse = jnp.sum(sse_part[:, 0, 0])
    cnt = jnp.sum(cnt_part[:, 0, :], axis=0)                         # (n_e,)
    # Forward value of al*mean((sg[z_q]-z)^2) + beta*mean((z_q-sg[z])^2).
    loss = (al + beta) * sse / jnp.float32(n * e_dim)
    e_mean = cnt / jnp.float32(n)
    perplexity = jnp.exp(-jnp.sum(e_mean * jnp.log(e_mean + 1e-10)))
    # Straight-through z + (z_q - z).detach() has forward value z_q.
    return loss, z_q, perplexity, min_encodings, min_idx


def _reference_forward(z, embedding, beta, al):
    """Pure-JAX reference mirroring the PyTorch forward (istrain=True)."""
    e_dim = embedding.shape[1]
    n_e = embedding.shape[0]
    zf = z.reshape(-1, e_dim)
    d = (jnp.sum(zf ** 2, axis=1, keepdims=True)
         + jnp.sum(embedding ** 2, axis=1)
         - 2.0 * zf @ embedding.T)
    idx = jnp.argmin(d, axis=1)
    enc = jax.nn.one_hot(idx, n_e, dtype=jnp.float32)
    zq = (enc @ embedding).reshape(z.shape)
    loss = (al + beta) * jnp.mean((zq - z) ** 2)
    e_mean = jnp.mean(enc, axis=0)
    perp = jnp.exp(-jnp.sum(e_mean * jnp.log(e_mean + 1e-10)))
    return loss, zq, perp, enc, idx[:, None]


if __name__ == "__main__":
    # Module hyperparameters (small, synthetic).
    n_e, e_dim = 128, 32
    beta, al = 0.25, 1.0
    B, S = 2, 8                       # z: (B, S, e_dim) -> N = 16 flattened rows

    key = jax.random.PRNGKey(0)
    k_emb, k_z = jax.random.split(key)
    # nn.Embedding weight init: uniform(-1/n_e, 1/n_e)
    embedding = jax.random.uniform(
        k_emb, (n_e, e_dim), minval=-1.0 / n_e, maxval=1.0 / n_e,
        dtype=jnp.float32)
    z = jax.random.normal(k_z, (B, S, e_dim), dtype=jnp.float32)

    loss, z_q, perplexity, min_encodings, min_idx = jax.block_until_ready(
        vector_quantizer_forward(z, embedding, beta, al, istrain=True))

    # Sanity check against a pure-JAX reference.
    r_loss, r_zq, r_perp, r_enc, r_idx = _reference_forward(z, embedding, beta, al)
    assert z_q.shape == z.shape
    assert min_encodings.shape == (B * S, n_e)
    assert min_idx.shape == (B * S, 1)
    assert jnp.array_equal(min_idx, r_idx.astype(jnp.int32))
    assert jnp.allclose(z_q, r_zq, atol=1e-4)
    assert jnp.allclose(loss, r_loss, atol=1e-5)
    assert jnp.allclose(perplexity, r_perp, atol=1e-3)

    # Also exercise the eval path.
    eval_idx, eval_zq = jax.block_until_ready(
        vector_quantizer_forward(z, embedding, beta, al, istrain=False))
    assert jnp.array_equal(eval_idx, min_idx)
    assert jnp.allclose(eval_zq, z_q, atol=1e-5)

    print("KERNEL_OK")
</pallas_src>

<mosaic_0001>
module attributes {stable_mosaic.version = 11 : i64} {
  func.func @_vq_kernel(%arg0: i32, %arg1: memref<128x32xf32, #tpu.memory_space<vmem>>, %arg2: memref<128x32xf32, #tpu.memory_space<vmem>>, %arg3: memref<1x128xf32, #tpu.memory_space<vmem>>, %arg4: memref<128x32xf32, #tpu.memory_space<vmem>>, %arg5: memref<128x128xf32, #tpu.memory_space<vmem>>, %arg6: memref<128x1xi32, #tpu.memory_space<vmem>>, %arg7: memref<1x1x128xf32, #tpu.memory_space<vmem>>, %arg8: memref<1x1x128xf32, #tpu.memory_space<vmem>>) attributes {dimension_semantics = [#tpu.dimension_semantics<parallel>], iteration_bounds = array<i64: 1>, scalar_prefetch = 0 : i64, scratch_operands = 0 : i64, tpu.core_type = #tpu.core_type<tc>, window_params = [{transform_indices = @transform_0, window_bounds = array<i64: 128, 32>}, {pipeline_mode = #tpu.pipeline_mode<synchronous>, transform_indices = @transform_1, window_bounds = array<i64: 128, 32>}, {pipeline_mode = #tpu.pipeline_mode<synchronous>, transform_indices = @transform_2, window_bounds = array<i64: 1, 128>}, {transform_indices = @transform_3, window_bounds = array<i64: 128, 32>}, {transform_indices = @transform_4, window_bounds = array<i64: 128, 128>}, {transform_indices = @transform_5, window_bounds = array<i64: 128, 1>}, {transform_indices = @transform_6, window_bounds = array<i64: 1, 1, 128>}, {transform_indices = @transform_7, window_bounds = array<i64: 1, 1, 128>}]} {
    %c0 = arith.constant 0 : index
    %c0_0 = arith.constant 0 : index
    %0 = vector.load %arg1[%c0, %c0_0] : memref<128x32xf32, #tpu.memory_space<vmem>>, vector<128x32xf32>
    %c0_1 = arith.constant 0 : index
    %c0_2 = arith.constant 0 : index
    %1 = vector.load %arg2[%c0_1, %c0_2] : memref<128x32xf32, #tpu.memory_space<vmem>>, vector<128x32xf32>
    %c0_3 = arith.constant 0 : index
    %c0_4 = arith.constant 0 : index
    %2 = vector.load %arg3[%c0_3, %c0_4] : memref<1x128xf32, #tpu.memory_space<vmem>>, vector<1x128xf32>
    %3 = arith.mulf %0, %0 : vector<128x32xf32>
    %cst = arith.constant dense<0.000000e+00> : vector<128xf32>
    %4 = vector.multi_reduction <add>, %3, %cst [1] : vector<128x32xf32> to vector<128xf32>
    %5 = vector.shape_cast %4 : vector<128xf32> to vector<128x1xf32>
    %cst_5 = arith.constant dense<0.000000e+00> : vector<128x128xf32>
    %6 = tpu.matmul %0, %1, %cst_5 {dimension_numbers = #tpu.dot_dimension_numbers<[1], [1], [0], [0], [0, 0, 1, 0], [], []>} : vector<128x32xf32>, vector<128x32xf32>, vector<128x128xf32> -> vector<128x128xf32>
    %7 = vector.broadcast %5 : vector<128x1xf32> to vector<128x128xf32>
    %8 = vector.broadcast %2 : vector<1x128xf32> to vector<128x128xf32>
    %9 = arith.addf %7, %8 : vector<128x128xf32>
    %cst_6 = arith.constant 2.000000e+00 : f32
    %10 = vector.broadcast %cst_6 : f32 to vector<128x128xf32>
    %11 = arith.mulf %10, %6 : vector<128x128xf32>
    %12 = arith.subf %9, %11 : vector<128x128xf32>
    %13 = tpu.iota {dimensions = array<i32: 1>} : vector<128x128xi32>
    %cst_7 = arith.constant dense<0x7F800000> : vector<128xf32>
    %14 = vector.multi_reduction <minimumf>, %12, %cst_7 [1] : vector<128x128xf32> to vector<128xf32>
    %15 = vector.shape_cast %14 : vector<128xf32> to vector<128x1xf32>
    %16 = vector.broadcast %15 : vector<128x1xf32> to vector<128x128xf32>
    %17 = arith.cmpf oeq, %12, %16 : vector<128x128xf32>
    %c128_i32 = arith.constant 128 : i32
    %18 = vector.broadcast %c128_i32 : i32 to vector<128x128xi32>
    %19 = arith.select %17, %13, %18 : vector<128x128xi1>, vector<128x128xi32>
    %cst_8 = arith.constant dense<2147483647> : vector<128xi32>
    %20 = vector.multi_reduction <minsi>, %19, %cst_8 [1] : vector<128x128xi32> to vector<128xi32>
    %21 = vector.shape_cast %20 : vector<128xi32> to vector<128x1xi32>
    %22 = vector.broadcast %21 : vector<128x1xi32> to vector<128x128xi32>
    %23 = arith.cmpi eq, %13, %22 : vector<128x128xi32>
    %24 = arith.extui %23 : vector<128x128xi1> to vector<128x128xi32>
    %25 = arith.sitofp %24 : vector<128x128xi32> to vector<128x128xf32>
    %cst_9 = arith.constant dense<0.000000e+00> : vector<128x32xf32>
    %26 = tpu.matmul %25, %1, %cst_9 {dimension_numbers = #tpu.dot_dimension_numbers<[1], [0], [0], [1], [0, 0, 1, 1], [], []>} : vector<128x128xf32>, vector<128x32xf32>, vector<128x32xf32> -> vector<128x32xf32>
    %c0_10 = arith.constant 0 : index
    %c0_11 = arith.constant 0 : index
    %27 = vector.load %arg4[%c0_10, %c0_11] : memref<128x32xf32, #tpu.memory_space<vmem>>, vector<128x32xf32>
    tpu.vector_store %arg4[%c0_10, %c0_11], %26 {strides = array<i32>} : memref<128x32xf32, #tpu.memory_space<vmem>>, vector<128x32xf32>,
    %c0_12 = arith.constant 0 : index
    %c0_13 = arith.constant 0 : index
    %28 = vector.load %arg5[%c0_12, %c0_13] : memref<128x128xf32, #tpu.memory_space<vmem>>, vector<128x128xf32>
    tpu.vector_store %arg5[%c0_12, %c0_13], %25 {strides = array<i32>} : memref<128x128xf32, #tpu.memory_space<vmem>>, vector<128x128xf32>,
    %29 = vector.shape_cast %20 : vector<128xi32> to vector<128x1xi32>
    %c0_14 = arith.constant 0 : index
    %c0_15 = arith.constant 0 : index
    %30 = vector.load %arg6[%c0_14, %c0_15] : memref<128x1xi32, #tpu.memory_space<vmem>>, vector<128x1xi32>
    tpu.vector_store %arg6[%c0_14, %c0_15], %29 {strides = array<i32>} : memref<128x1xi32, #tpu.memory_space<vmem>>, vector<128x1xi32>,
    %c128_i32_16 = arith.constant 128 : i32
    %31 = arith.muli %arg0, %c128_i32_16 : i32
    %32 = tpu.iota {dimensions = array<i32: 0>} : vector<128x1xi32>
    %33 = vector.broadcast %31 : i32 to vector<128x1xi32>
    %34 = arith.addi %33, %32 : vector<128x1xi32>
    %c16_i32 = arith.constant 16 : i32
    %35 = vector.broadcast %c16_i32 : i32 to vector<128x1xi32>
    %36 = arith.cmpi slt, %34, %35 : vector<128x1xi32>
    %37 = arith.extui %36 : vector<128x1xi1> to vector<128x1xi32>
    %38 = arith.sitofp %37 : vector<128x1xi32> to vector<128x1xf32>
    %39 = arith.subf %26, %0 : vector<128x32xf32>
    %40 = vector.broadcast %38 : vector<128x1xf32> to vector<128x32xf32>
    %41 = arith.mulf %39, %40 : vector<128x32xf32>
    %42 = arith.mulf %41, %41 : vector<128x32xf32>
    %43 = vector.shape_cast %42 : vector<128x32xf32> to vector<1x128x32xf32>
    %cst_17 = arith.constant dense<0.000000e+00> : vector<1xf32>
    %44 = vector.multi_reduction <add>, %43, %cst_17 [1, 2] : vector<1x128x32xf32> to vector<1xf32>
    %45 = vector.shape_cast %44 : vector<1xf32> to vector<1x1x1xf32>
    %46 = vector.extract %45[0, 0, 0] : f32 from vector<1x1x1xf32>
    %47 = vector.broadcast %46 : f32 to vector<1x128xf32>
    %c0_18 = arith.constant 0 : index
    %c0_19 = arith.constant 0 : index
    %c0_20 = arith.constant 0 : index
    %48 = vector.load %arg7[%c0_18, %c0_19, %c0_20] : memref<1x1x128xf32, #tpu.memory_space<vmem>>, vector<1x1x128xf32>
    %49 = vector.shape_cast %48 : vector<1x1x128xf32> to vector<1x128xf32>
    %50 = vector.shape_cast %47 : vector<1x128xf32> to vector<1x1x128xf32>
    tpu.vector_store %arg7[%c0_18, %c0_19, %c0_20], %50 {strides = array<i32>} : memref<1x1x128xf32, #tpu.memory_space<vmem>>, vector<1x1x128xf32>,
    %51 = vector.broadcast %38 : vector<128x1xf32> to vector<128x128xf32>
    %52 = arith.mulf %25, %51 : vector<128x128xf32>
    %cst_21 = arith.constant dense<0.000000e+00> : vector<128xf32>
    %53 = vector.multi_reduction <add>, %52, %cst_21 [0] : vector<128x128xf32> to vector<128xf32>
    %54 = vector.shape_cast %53 : vector<128xf32> to vector<1x128xf32>
    %c0_22 = arith.constant 0 : index
    %c0_23 = arith.constant 0 : index
    %c0_24 = arith.constant 0 : index
    %55 = vector.load %arg8[%c0_22, %c0_23, %c0_24] : memref<1x1x128xf32, #tpu.memory_space<vmem>>, vector<1x1x128xf32>
    %56 = vector.shape_cast %55 : vector<1x1x128xf32> to vector<1x128xf32>
    %57 = vector.shape_cast %54 : vector<1x128xf32> to vector<1x1x128xf32>
    tpu.vector_store %arg8[%c0_22, %c0_23, %c0_24], %57 {strides = array<i32>} : memref<1x1x128xf32, #tpu.memory_space<vmem>>, vector<1x1x128xf32>,
    return
  }
  func.func @transform_0(%arg0: i32) -> (i32, i32) {
    %c0_i32 = arith.constant 0 : i32
    %c0_i32_0 = arith.constant 0 : i32
    return %arg0, %c0_i32 : i32, i32
  }
  func.func @transform_1(%arg0: i32) -> (i32, i32) {
    %c0_i32 = arith.constant 0 : i32
    %c0_i32_0 = arith.constant 0 : i32
    %c0_i32_1 = arith.constant 0 : i32
    return %c0_i32, %c0_i32_0 : i32, i32
  }
  func.func @transform_2(%arg0: i32) -> (i32, i32) {
    %c0_i32 = arith.constant 0 : i32
    %c0_i32_0 = arith.constant 0 : i32
    %c0_i32_1 = arith.constant 0 : i32
    return %c0_i32, %c0_i32_0 : i32, i32
  }
  func.func @transform_3(%arg0: i32) -> (i32, i32) {
    %c0_i32 = arith.constant 0 : i32
    %c0_i32_0 = arith.constant 0 : i32
    return %arg0, %c0_i32 : i32, i32
  }
  func.func @transform_4(%arg0: i32) -> (i32, i32) {
    %c0_i32 = arith.constant 0 : i32
    %c0_i32_0 = arith.constant 0 : i32
    return %arg0, %c0_i32 : i32, i32
  }
  func.func @transform_5(%arg0: i32) -> (i32, i32) {
    %c0_i32 = arith.constant 0 : i32
    %c0_i32_0 = arith.constant 0 : i32
    return %arg0, %c0_i32 : i32, i32
  }
  func.func @transform_6(%arg0: i32) -> (i32, i32, i32) {
    %c0_i32 = arith.constant 0 : i32
    %c0_i32_0 = arith.constant 0 : i32
    %c0_i32_1 = arith.constant 0 : i32
    return %arg0, %c0_i32, %c0_i32_0 : i32, i32, i32
  }
  func.func @transform_7(%arg0: i32) -> (i32, i32, i32) {
    %c0_i32 = arith.constant 0 : i32
    %c0_i32_0 = arith.constant 0 : i32
    %c0_i32_1 = arith.constant 0 : i32
    return %arg0, %c0_i32, %c0_i32_0 : i32, i32, i32
  }
}

</mosaic_0001>

<bundles_post_ra>
// kernel: tpu_custom_call.1
= control target key start
LH: loop header
LB: loop body
LE: loop exit
PB: predicated region body
PF: predicated region fallthrough
CT: control target
= control target key end

     0   :  { %13 = vsyncpa [#allocation3], 0  ;;  %vm70_vm0 = vcmask 261120   ;;  %s2378_s0 = inlined_call_operand.vmem [shape: f32[128,32], index: 0, kind: input, shape index: {}]   ;;  %s2379_s1 = inlined_call_operand.vmem [shape: f32[128,32], index: 1, kind: input, shape index: {}]   ;;  %s2380_s2 = inlined_call_operand.vmem [shape: f32[1,128], index: 2, kind: input, shape index: {}]   ;;  %s2381_s3 = inlined_call_operand.vmem [shape: f32[128,32], index: 3, kind: output, shape index: {0}]   ;;  %s2382_s4 = inlined_call_operand.hbm [shape: f32[128,128], index: 4, kind: output, shape index: {1}]   ;;  %s2383_s5 = inlined_call_operand.vmem [shape: s32[128,1], index: 5, kind: output, shape index: {2}]   ;;  %s2384_s6 = inlined_call_operand.hbm [shape: f32[1,1,128], index: 6, kind: output, shape index: {3}]   ;;  %s2385_s7 = inlined_call_operand.hbm [shape: f32[1,1,128], index: 7, kind: output, shape index: {4}]  }
   0x1   :  { %v52_v0 = vld [vmem:[%s2379_s1 + $0x78] sm:$0xff]  ;;  %v51_v1 = vld [vmem:[%s2379_s1 + $0x70] sm:$0xff]  ;;  %v50_v2 = vld [vmem:[%s2379_s1 + $0x68] sm:$0xff] }
   0x2   :  { %1337 = vmatprep.subr.msk.mxu0 %vm70_vm0, %v52_v0  ;;  %1393 = vmatprep.subr.mxu1 %v52_v0  ;;  %v21_v3 = vld [vmem:[%s2378_s0] sm:$0xff]  ;;  %v1603_v4 = vld [vmem:[%s2378_s0 + $0x8] sm:$0xff]  ;;  %v1610_v5 = vld [vmem:[%s2378_s0 + $0x10] sm:$0xff] }
   0x3   :  { %1338 = vmatpush3.xpose.msk.msra.mxu0 %vm70_vm0, %v52_v0  ;;  %1394 = vmatpush3.msra.mxu1 %v52_v0  ;;  %v1615_v6 = vld [vmem:[%s2378_s0 + $0x18] sm:$0xff]  ;;  %v54_v7 = vmul.f32 %v21_v3, %v21_v3  ;;  %v55_v8 = vmul.f32 %v1603_v4, %v1603_v4  ;;  %v49_v9 = vld [vmem:[%s2379_s1 + $0x60] sm:$0xff]  ;;  %v56_v10 = vmul.f32 %v1610_v5, %v1610_v5  ;;  %v1641_v16 = vld [vmem:[%s2378_s0 + $0x28] sm:$0xff] }
   0x4   :  { %1339 = vmatprep.subr.msk.mxu0 %vm70_vm0, %v51_v1  ;;  %1395 = vmatprep.subr.mxu1 %v51_v1  ;;  %v57_v11 = vmul.f32 %v1615_v6, %v1615_v6  ;;  %v1631_v13 = vld [vmem:[%s2378_s0 + $0x20] sm:$0xff]  ;;  %v48_v15 = vld [vmem:[%s2379_s1 + $0x58] sm:$0xff]  ;;  %v59_v20 = vmul.f32 %v1641_v16, %v1641_v16 }
   0x5   :  { %1396 = vmatpush3.msra.mxu1 %v51_v1  ;;  %1369 = vmatprep.mubr.msk.f32.mxu0 %vm70_vm0, %v21_v3  ;;  %v71_v12 = vsel %vm70_vm0, %v54_v7, 0.0  ;;  %v77_v14 = vsel %vm70_vm0, %v56_v10, 0.0  ;;  %v74_v17 = vsel %vm70_vm0, %v55_v8, 0.0  ;;  %v58_v18 = vmul.f32 %v1631_v13, %v1631_v13 }
   0x6   :  { %1397 = vmatprep.subr.mxu1 %v50_v2  ;;  %72 = vadd.xlane.f32.xlu0 %v71_v12  ;;  %v80_v19 = vsel %vm70_vm0, %v57_v11, 0.0 }
   0x7   :  { %1340 = vmatpush3.xpose.msk.msra.mxu0 %vm70_vm0, %v51_v1  ;;  %1398 = vmatpush3.msra.mxu1 %v50_v2 }
   0x8   :  { %1341 = vmatprep.subr.msk.mxu0 %vm70_vm0, %v50_v2  ;;  %1399 = vmatprep.subr.mxu1 %v49_v9 }
   0x9   :  { %1400 = vmatpush3.msra.mxu1 %v49_v9  ;;  %78 = vadd.xlane.f32.xlu1 %v77_v14 }
   0xa   :  { %1401 = vmatprep.subr.mxu1 %v48_v15 }
   0xb   :  { %1342 = vmatpush3.xpose.msk.msra.mxu0 %vm70_vm0, %v50_v2 }
   0xc   :  { %1343 = vmatprep.subr.msk.mxu0 %vm70_vm0, %v49_v9 }
   0xd   :  { %14 = vsyncpa [#allocation5], 0  ;;  %v47_v21 = vld [vmem:[%s2379_s1 + $0x50] sm:$0xff]  ;;  %1402 = vmatpush3.msra.mxu1 %v48_v15  ;;  %75 = vadd.xlane.f32.xlu0 %v74_v17  ;;  %v1662_v23 = vld [vmem:[%s2378_s0 + $0x38] sm:$0xff]  ;;  %v83_v24 = vsel %vm70_vm0, %v58_v18, 0.0  ;;  %v86_v27 = vsel %vm70_vm0, %v59_v20, 0.0 }
   0xe   :  { %v1656_v22 = vld [vmem:[%s2378_s0 + $0x30] sm:$0xff]  ;;  %1403 = vmatprep.subr.mxu1 %v47_v21  ;;  %81 = vadd.xlane.f32.xlu1 %v80_v19  ;;  %v46_v26 = vld [vmem:[%s2379_s1 + $0x48] sm:$0xff]  ;;  %v61_v28 = vmul.f32 %v1662_v23, %v1662_v23  ;;  %v1677_v29 = vld [vmem:[%s2378_s0 + $0x40] sm:$0xff] }
   0xf   :  { %1344 = vmatpush3.xpose.msk.msra.mxu0 %vm70_vm0, %v49_v9  ;;  %v60_v25 = vmul.f32 %v1656_v22, %v1656_v22  ;;  %1404 = vmatpush3.msra.mxu1 %v47_v21  ;;  %v45_v30 = vld [vmem:[%s2379_s1 + $0x40] sm:$0xff]  ;;  %v1686_v31 = vld [vmem:[%s2378_s0 + $0x48] sm:$0xff]  ;;  %v62_v33 = vmul.f32 %v1677_v29, %v1677_v29  ;;  %v44_v36 = vld [vmem:[%s2379_s1 + $0x38] sm:$0xff] }
  0x10   :  { %1345 = vmatprep.subr.msk.mxu0 %vm70_vm0, %v48_v15  ;;  %1405 = vmatprep.subr.mxu1 %v46_v26  ;;  %v92_v34 = vsel %vm70_vm0, %v61_v28, 0.0  ;;  %v63_v35 = vmul.f32 %v1686_v31, %v1686_v31  ;;  %v1701_v37 = vld [vmem:[%s2378_s0 + $0x50] sm:$0xff]  ;;  %v1707_v38 = vld [vmem:[%s2378_s0 + $0x58] sm:$0xff]  ;;  %v1722_v44 = vld [vmem:[%s2378_s0 + $0x60] sm:$0xff] }
  0x11   :  { %84 = vadd.xlane.f32.xlu0 %v83_v24  ;;  %1406 = vmatpush3.msra.mxu1 %v46_v26  ;;  %v89_v32 = vsel %vm70_vm0, %v60_v25, 0.0  ;;  %v95_v39 = vsel %vm70_vm0, %v62_v33, 0.0  ;;  %v64_v40 = vmul.f32 %v1701_v37, %v1701_v37  ;;  %v43_v41 = vld [vmem:[%s2379_s1 + $0x30] sm:$0xff]  ;;  %v65_v43 = vmul.f32 %v1707_v38, %v1707_v38  ;;  %v42_v45 = vld [vmem:[%s2379_s1 + $0x28] sm:$0xff]  ;;  %v41_v51 = vld [vmem:[%s2379_s1 + $0x20] sm:$0xff] }
  0x12   :  { %87 = vadd.xlane.f32.xlu1 %v86_v27  ;;  %1407 = vmatprep.subr.mxu1 %v45_v30  ;;  %v98_v42 = vsel %vm70_vm0, %v63_v35, 0.0  ;;  %v1731_v46 = vld [vmem:[%s2378_s0 + $0x68] sm:$0xff]  ;;  %v66_v48 = vmul.f32 %v1722_v44, %v1722_v44  ;;  %v35_v52 = vld [vmem:[%s2378_s0 + $0x70] sm:$0xff]  ;;  %v36_v53 = vld [vmem:[%s2378_s0 + $0x78] sm:$0xff] }
  0x13   :  { %1346 = vmatpush3.xpose.msk.msra.mxu0 %vm70_vm0, %v48_v15  ;;  %1408 = vmatpush3.msra.mxu1 %v45_v30  ;;  %v101_v47 = vsel %vm70_vm0, %v64_v40, 0.0  ;;  %v104_v49 = vsel %vm70_vm0, %v65_v43, 0.0  ;;  %v67_v50 = vmul.f32 %v1731_v46, %v1731_v46  ;;  %v68_v55 = vmul.f32 %v35_v52, %v35_v52  ;;  %v40_v56 = vld [vmem:[%s2379_s1 + $0x18] sm:$0xff]  ;;  %v39_v59 = vld [vmem:[%s2379_s1 + $0x10] sm:$0xff]  ;;  %v38_v62 = vld [vmem:[%s2379_s1 + $0x8] sm:$0xff] }
  0x14   :  { %1347 = vmatprep.subr.msk.mxu0 %vm70_vm0, %v47_v21  ;;  %1409 = vmatprep.subr.mxu1 %v44_v36  ;;  %v107_v54 = vsel %vm70_vm0, %v66_v48, 0.0  ;;  %v69_v58 = vmul.f32 %v36_v53, %v36_v53  ;;  %v37_v63 = vld [vmem:[%s2379_s1] sm:$0xff] }
  0x15   :  { %90 = vadd.xlane.f32.xlu0 %v89_v32  ;;  %1410 = vmatpush3.msra.mxu1 %v44_v36  ;;  %v110_v57 = vsel %vm70_vm0, %v67_v50, 0.0  ;;  %v113_v60 = vsel %vm70_vm0, %v68_v55, 0.0 }
  0x16   :  { %93 = vadd.xlane.f32.xlu1 %v92_v34  ;;  %1411 = vmatprep.subr.mxu1 %v43_v41  ;;  %v116_v61 = vsel %vm70_vm0, %v69_v58, 0.0 }
  0x17   :  { %1348 = vmatpush3.xpose.msk.msra.mxu0 %vm70_vm0, %v47_v21  ;;  %1412 = vmatpush3.msra.mxu1 %v43_v41 }
  0x18   :  { %1349 = vmatprep.subr.msk.mxu0 %vm70_vm0, %v46_v26  ;;  %1413 = vmatprep.subr.mxu1 %v42_v45 }
  0x19   :  { %96 = vadd.xlane.f32.xlu0 %v95_v39  ;;  %1414 = vmatpush3.msra.mxu1 %v42_v45 }
  0x1a   :  { %99 = vadd.xlane.f32.xlu1 %v98_v42  ;;  %1415 = vmatprep.subr.mxu1 %v41_v51 }
  0x1b   :  { %1350 = vmatpush3.xpose.msk.msra.mxu0 %vm70_vm0, %v46_v26  ;;  %1416 = vmatpush3.msra.mxu1 %v41_v51 }
  0x1c   :  { %1351 = vmatprep.subr.msk.mxu0 %vm70_vm0, %v45_v30  ;;  %1417 = vmatprep.subr.mxu1 %v40_v56 }
  0x1d   :  { %102 = vadd.xlane.f32.xlu0 %v101_v47  ;;  %1418 = vmatpush3.msra.mxu1 %v40_v56 }
  0x1e   :  { %105 = vadd.xlane.f32.xlu1 %v104_v49  ;;  %1419 = vmatprep.subr.mxu1 %v39_v59 }
  0x1f   :  { %1352 = vmatpush3.xpose.msk.msra.mxu0 %vm70_vm0, %v45_v30  ;;  %1420 = vmatpush3.msra.mxu1 %v39_v59 }
  0x20   :  { %1353 = vmatprep.subr.msk.mxu0 %vm70_vm0, %v44_v36  ;;  %1421 = vmatprep.subr.mxu1 %v38_v62 }
  0x21   :  { %108 = vadd.xlane.f32.xlu0 %v107_v54  ;;  %1422 = vmatpush3.msra.mxu1 %v38_v62 }
  0x22   :  { %111 = vadd.xlane.f32.xlu1 %v110_v57  ;;  %1423 = vmatprep.subr.mxu1 %v37_v63 }
  0x23   :  { %1354 = vmatpush3.xpose.msk.msra.mxu0 %vm70_vm0, %v44_v36  ;;  %1424 = vmatpush3.msra.mxu1 %v37_v63 }
  0x24   :  { %1355 = vmatprep.subr.msk.mxu0 %vm70_vm0, %v43_v41 }
  0x25   :  { %114 = vadd.xlane.f32.xlu0 %v113_v60 }
  0x26   :  { %117 = vadd.xlane.f32.xlu1 %v116_v61 }
  0x27   :  { %1356 = vmatpush3.xpose.msk.msra.mxu0 %vm70_vm0, %v43_v41 }
  0x28   :  { %1357 = vmatprep.subr.msk.mxu0 %vm70_vm0, %v42_v45 }
  0x2b   :  { %1358 = vmatpush3.xpose.msk.msra.mxu0 %vm70_vm0, %v42_v45 }
  0x2c   :  { %1359 = vmatprep.subr.msk.mxu0 %vm70_vm0, %v41_v51 }
  0x2f   :  { %1360 = vmatpush3.xpose.msk.msra.mxu0 %vm70_vm0, %v41_v51 }
  0x30   :  { %1361 = vmatprep.subr.msk.mxu0 %vm70_vm0, %v40_v56 }
  0x33   :  { %1362 = vmatpush3.xpose.msk.msra.mxu0 %vm70_vm0, %v40_v56 }
  0x34   :  { %1363 = vmatprep.subr.msk.mxu0 %vm70_vm0, %v39_v59 }
  0x37   :  { %1364 = vmatpush3.xpose.msk.msra.mxu0 %vm70_vm0, %v39_v59 }
  0x38   :  { %1365 = vmatprep.subr.msk.mxu0 %vm70_vm0, %v38_v62 }
  0x3b   :  { %1366 = vmatpush3.xpose.msk.msra.mxu0 %vm70_vm0, %v38_v62 }
  0x3c   :  { %1367 = vmatprep.subr.msk.mxu0 %vm70_vm0, %v37_v63 }
  0x3f   :  { %1368 = vmatpush3.xpose.msk.msra.mxu0 %vm70_vm0, %v37_v63 }
  0x42   :  { %1370 = vmatmul.mubr.msk.f32.vlgmr.msra.gmra.mxu0 %vm70_vm0, %v1603_v4 }
  0x43   :  { %1372 = vmatprep.mubr.msk.f32.mxu0 %vm70_vm0, %v1610_v5  ;;  %v1813_v5 = vld [vmem:[%s2380_s2] ss:$0 sm:$0xff] }
  0x46   :  { %1373 = vmatmul.mubr.msk.f32.gmra.mxu0 %vm70_vm0, %v1615_v6 }
  0x47   :  { %1375 = vmatprep.mubr.msk.f32.mxu0 %vm70_vm0, %v1631_v13 }
  0x4a   :  { %1376 = vmatmul.mubr.msk.f32.gmra.mxu0 %vm70_vm0, %v1641_v16 }
  0x4b   :  { %1378 = vmatprep.mubr.msk.f32.mxu0 %vm70_vm0, %v1656_v22 }
  0x4e   :  { %1379 = vmatmul.mubr.msk.f32.gmra.mxu0 %vm70_vm0, %v1662_v23 }
  0x4f   :  { %1381 = vmatprep.mubr.msk.f32.mxu0 %vm70_vm0, %v1677_v29 }
  0x52   :  { %1382 = vmatmul.mubr.msk.f32.gmra.mxu0 %vm70_vm0, %v1686_v31 }
  0x53   :  { %1384 = vmatprep.mubr.msk.f32.mxu0 %vm70_vm0, %v1701_v37 }
  0x56   :  { %1385 = vmatmul.mubr.msk.f32.gmra.mxu0 %vm70_vm0, %v1707_v38 }
  0x57   :  { %1387 = vmatprep.mubr.msk.f32.mxu0 %vm70_vm0, %v1722_v44 }
  0x5a   :  { %1388 = vmatmul.mubr.msk.f32.gmra.mxu0 %vm70_vm0, %v1731_v46 }
  0x5b   :  { %1390 = vmatprep.mubr.msk.f32.mxu0 %vm70_vm0, %v35_v52 }
  0x5e   :  { %1391 = vmatmul.mubr.msk.f32.gmra.mxu0 %vm70_vm0, %v36_v53 }
  0x8f   :  { %v73_v1 = vpop.xlane.xlu0 %72 }
  0x90   :  { %v366_v13 = vadd.f32 %v1813_v5, %v73_v1 }
  0x92   :  { %v79_v0 = vpop.xlane.xlu1 %78 }
  0x93   :  { %v368_v22 = vadd.f32 %v1813_v5, %v79_v0 }
  0x96   :  { %v76_v3 = vpop.xlane.xlu0 %75 }
  0x97   :  { %v82_v2 = vpop.xlane.xlu1 %81  ;;  %v367_v7 = vadd.f32 %v1813_v5, %v76_v3 }
  0x98   :  { %v369_v15 = vadd.f32 %v1813_v5, %v82_v2 }
  0x9a   :  { %v85_v6 = vpop.xlane.xlu0 %84 }
  0x9b   :  { %v88_v4 = vpop.xlane.xlu1 %87  ;;  %v370_v29 = vadd.f32 %v1813_v5, %v85_v6 }
  0x9c   :  { %v371_v24 = vadd.f32 %v1813_v5, %v88_v4 }
  0x9e   :  { %v91_v12 = vpop.xlane.xlu0 %90 }
  0x9f   :  { %v94_v9 = vpop.xlane.xlu1 %93  ;;  %v372_v38 = vadd.f32 %v1813_v5, %v91_v12 }
  0xa0   :  { %v373_v33 = vadd.f32 %v1813_v5, %v94_v9 }
  0xa2   :  { %v97_v27 = vpop.xlane.xlu0 %96 }
  0xa3   :  { %v100_v21 = vpop.xlane.xlu1 %99  ;;  %v374_v47 = vadd.f32 %v1813_v5, %v97_v27 }
  0xa4   :  { %v375_v43 = vadd.f32 %v1813_v5, %v100_v21 }
  0xa6   :  { %v103_v41 = vpop.xlane.xlu0 %102 }
  0xa7   :  { %v106_v36 = vpop.xlane.xlu1 %105  ;;  %v376_v57 = vadd.f32 %v1813_v5, %v103_v41 }
  0xa8   :  { %v377_v52 = vadd.f32 %v1813_v5, %v106_v36 }
  0xaa   :  { %v109_v55 = vpop.xlane.xlu0 %108 }
  0xab   :  { %v112_v50 = vpop.xlane.xlu1 %111  ;;  %v378_v2 = vadd.f32 %v1813_v5, %v109_v55 }
  0xac   :  { %v379_v61 = vadd.f32 %v1813_v5, %v112_v50 }
  0xae   :  { %v115_v6 = vpop.xlane.xlu0 %114 }
  0xaf   :  { %v118_v0 = vpop.xlane.xlu1 %117  ;;  %v380_v12 = vadd.f32 %v1813_v5, %v115_v6 }
 0x102   :  { %v1371_v8 = vpop.f32.mrf.mxu0 }
 0x103   :  { %v383_v10 = vmul.f32 2.0, %v1371_v8  ;;  %v381_v8 = vadd.f32 %v1813_v5, %v118_v0 }
 0x104   :  { %v281_v11 = vpop.f32.mrf.mxu0 }
 0x105   :  { %v382_v14 = vmul.f32 2.0, %v281_v11  ;;  %v1818_v16 = vsub.f32 %v367_v7, %v383_v10 }
 0x106   :  { %v1374_v17 = vpop.f32.mrf.mxu0 }
 0x107   :  { %v385_v18 = vmul.f32 2.0, %v1374_v17  ;;  %418 = vmin.xlane.f32.xlu1 %v1818_v16  ;;  %v1821_v19 = vsub.f32 %v366_v13, %v382_v14 }
 0x108   :  { %v291_v20 = vpop.f32.mrf.mxu0 }
 0x109   :  { %v384_v23 = vmul.f32 2.0, %v291_v20  ;;  %416 = vmin.xlane.f32.xlu0 %v1821_v19  ;;  %v1826_v25 = vsub.f32 %v369_v15, %v385_v18  ;;  %v414_v20 = vlaneseq }
 0x10a   :  { %v1377_v26 = vpop.f32.mrf.mxu0 }
 0x10b   :  { %v387_v28 = vmul.f32 2.0, %v1377_v26  ;;  %422 = vmin.xlane.f32.xlu1 %v1826_v25  ;;  %v1830_v30 = vsub.f32 %v368_v22, %v384_v23  ;;  %v1879_v21 = vand.u32 127, %v414_v20 }
 0x10c   :  { %v301_v31 = vpop.f32.mrf.mxu0 }
 0x10d   :  { %v386_v32 = vmul.f32 2.0, %v301_v31  ;;  %420 = vmin.xlane.f32.xlu0 %v1830_v30  ;;  %v1834_v34 = vsub.f32 %v371_v24, %v387_v28 }
 0x10e   :  { %v1380_v35 = vpop.f32.mrf.mxu0 }
 0x10f   :  { %v389_v37 = vmul.f32 2.0, %v1380_v35  ;;  %426 = vmin.xlane.f32.xlu1 %v1834_v34  ;;  %v1838_v39 = vsub.f32 %v370_v29, %v386_v32 }
 0x110   :  { %v311_v40 = vpop.f32.mrf.mxu0 }
 0x111   :  { %v388_v42 = vmul.f32 2.0, %v311_v40  ;;  %424 = vmin.xlane.f32.xlu0 %v1838_v39  ;;  %v1842_v44 = vsub.f32 %v373_v33, %v389_v37 }
 0x112   :  { %v1383_v45 = vpop.f32.mrf.mxu0 }
 0x113   :  { %v391_v46 = vmul.f32 2.0, %v1383_v45  ;;  %430 = vmin.xlane.f32.xlu1 %v1842_v44  ;;  %v1846_v48 = vsub.f32 %v372_v38, %v388_v42 }
 0x114   :  { %v321_v49 = vpop.f32.mrf.mxu0 }
 0x115   :  { %v390_v51 = vmul.f32 2.0, %v321_v49  ;;  %428 = vmin.xlane.f32.xlu0 %v1846_v48  ;;  %v1850_v53 = vsub.f32 %v375_v43, %v391_v46 }
 0x116   :  { %v1386_v54 = vpop.f32.mrf.mxu0 }
 0x117   :  { %v393_v56 = vmul.f32 2.0, %v1386_v54  ;;  %434 = vmin.xlane.f32.xlu1 %v1850_v53  ;;  %v1854_v58 = vsub.f32 %v374_v47, %v390_v51 }
 0x118   :  { %v331_v59 = vpop.f32.mrf.mxu0 }
 0x119   :  { %v392_v60 = vmul.f32 2.0, %v331_v59  ;;  %432 = vmin.xlane.f32.xlu0 %v1854_v58  ;;  %v1858_v62 = vsub.f32 %v377_v52, %v393_v56 }
 0x11a   :  { %v1389_v63 = vpop.f32.mrf.mxu0 }
 0x11b   :  { %v395_v1 = vmul.f32 2.0, %v1389_v63  ;;  %438 = vmin.xlane.f32.xlu1 %v1858_v62  ;;  %v1862_v3 = vsub.f32 %v376_v57, %v392_v60 }
 0x11c   :  { %v341_v4 = vpop.f32.mrf.mxu0 }
 0x11d   :  { %v394_v7 = vmul.f32 2.0, %v341_v4  ;;  %436 = vmin.xlane.f32.xlu0 %v1862_v3  ;;  %v1866_v9 = vsub.f32 %v379_v61, %v395_v1 }
 0x11e   :  { %v1392_v10 = vpop.f32.mrf.mxu0 }
 0x11f   :  { %v397_v11 = vmul.f32 2.0, %v1392_v10  ;;  %442 = vmin.xlane.f32.xlu1 %v1866_v9  ;;  %v1870_v13 = vsub.f32 %v378_v2, %v394_v7 }
 0x120   :  { %v351_v14 = vpop.f32.mrf.mxu0 }
 0x121   :  { %v396_v15 = vmul.f32 2.0, %v351_v14  ;;  %440 = vmin.xlane.f32.xlu0 %v1870_v13  ;;  %v1873_v17 = vsub.f32 %v381_v8, %v397_v11 }
 0x123   :  { %446 = vmin.xlane.f32.xlu1 %v1873_v17  ;;  %v1876_v18 = vsub.f32 %v380_v12, %v396_v15 }
 0x125   :  { %444 = vmin.xlane.f32.xlu0 %v1876_v18 }
 0x190   :  { %v419_v22 = vpop.xlane.xlu1 %418 }
 0x191   :  { %vm449_vm1 = vcmp.eq.f32.partialorder %v1818_v16, %v419_v22 }
 0x192   :  { %v1883_v5 = vsel %vm449_vm1, %v1879_v21, 128  ;;  %v417_v23 = vpop.xlane.xlu0 %416 }
 0x193   :  { %vm448_vm2 = vcmp.eq.f32.partialorder %v1821_v19, %v417_v23  ;;  %v495_v24 = vshra.s32 %v1883_v5, 16 }
 0x194   :  { %v1888_v26 = vsel %vm448_vm2, %v1879_v21, 128  ;;  %v423_v27 = vpop.xlane.xlu1 %422 }
 0x195   :  { %vm451_vm3 = vcmp.eq.f32.partialorder %v1826_v25, %v423_v27  ;;  %v1891_v28 = vcvt.s32.f32 %v495_v24  ;;  %v481_v29 = vshra.s32 %v1888_v26, 16  ;;  %v480_v24 = vand.u32 65535, %v1888_v26 }
 0x196   :  { %v1895_v16 = vsel %vm451_vm3, %v1879_v21, 128  ;;  %v421_v31 = vpop.xlane.xlu0 %420 }
 0x197   :  { %vm450_vm4 = vcmp.eq.f32.partialorder %v1830_v30, %v421_v31  ;;  %498 = vmin.xlane.f32.xlu1 %v1891_v28  ;;  %v1899_v19 = vcvt.s32.f32 %v481_v29  ;;  %v523_v32 = vshra.s32 %v1895_v16, 16  ;;  %v522_v27 = vand.u32 65535, %v1895_v16 }
 0x198   :  { %v1903_v33 = vsel %vm450_vm4, %v1879_v21, 128  ;;  %v427_v25 = vpop.xlane.xlu1 %426 }
 0x199   :  { %vm453_vm5 = vcmp.eq.f32.partialorder %v1834_v34, %v427_v25  ;;  %484 = vmin.xlane.f32.xlu0 %v1899_v19  ;;  %v1907_v35 = vcvt.s32.f32 %v523_v32  ;;  %v509_v36 = vshra.s32 %v1903_v33, 16  ;;  %v508_v32 = vand.u32 65535, %v1903_v33 }
 0x19a   :  { %v1911_v30 = vsel %vm453_vm5, %v1879_v21, 128  ;;  %v425_v37 = vpop.xlane.xlu0 %424 }
 0x19b   :  { %vm452_vm6 = vcmp.eq.f32.partialorder %v1838_v39, %v425_v37  ;;  %526 = vmin.xlane.f32.xlu1 %v1907_v35  ;;  %v1915_v38 = vcvt.s32.f32 %v509_v36  ;;  %v551_v40 = vshra.s32 %v1911_v30, 16  ;;  %v482_v37 = vcvt.s32.f32 %v480_v24 }
 0x19c   :  { %v1919_v34 = vsel %vm452_vm6, %v1879_v21, 128  ;;  %v431_v41 = vpop.xlane.xlu1 %430 }
 0x19d   :  { %vm455_vm7 = vcmp.eq.f32.partialorder %v1842_v44, %v431_v41  ;;  %512 = vmin.xlane.f32.xlu0 %v1915_v38  ;;  %v1923_v42 = vcvt.s32.f32 %v551_v40  ;;  %v537_v43 = vshra.s32 %v1919_v34, 16  ;;  %v524_v40 = vcvt.s32.f32 %v522_v27 }
 0x19e   :  { %v1927_v39 = vsel %vm455_vm7, %v1879_v21, 128  ;;  %v429_v45 = vpop.xlane.xlu0 %428 }
 0x19f   :  { %vm454_vm8 = vcmp.eq.f32.partialorder %v1846_v48, %v429_v45  ;;  %554 = vmin.xlane.f32.xlu1 %v1923_v42  ;;  %v1931_v46 = vcvt.s32.f32 %v537_v43  ;;  %v579_v47 = vshra.s32 %v1927_v39, 16  ;;  %v510_v43 = vcvt.s32.f32 %v508_v32 }
 0x1a0   :  { %v1935_v44 = vsel %vm454_vm8, %v1879_v21, 128  ;;  %v435_v49 = vpop.xlane.xlu1 %434 }
 0x1a1   :  { %vm457_vm9 = vcmp.eq.f32.partialorder %v1850_v53, %v435_v49  ;;  %540 = vmin.xlane.f32.xlu0 %v1931_v46  ;;  %v1939_v50 = vcvt.s32.f32 %v579_v47  ;;  %v565_v51 = vshra.s32 %v1935_v44, 16 }
 0x1a2   :  { %v1943_v48 = vsel %vm457_vm9, %v1879_v21, 128  ;;  %v433_v52 = vpop.xlane.xlu0 %432 }
 0x1a3   :  { %vm456_vm10 = vcmp.eq.f32.partialorder %v1854_v58, %v433_v52  ;;  %582 = vmin.xlane.f32.xlu1 %v1939_v50  ;;  %v1947_v54 = vcvt.s32.f32 %v565_v51  ;;  %v607_v55 = vshra.s32 %v1943_v48, 16 }
 0x1a4   :  { %v1951_v53 = vsel %vm456_vm10, %v1879_v21, 128  ;;  %v439_v56 = vpop.xlane.xlu1 %438 }
 0x1a5   :  { %vm459_vm11 = vcmp.eq.f32.partialorder %v1858_v62, %v439_v56  ;;  %568 = vmin.xlane.f32.xlu0 %v1947_v54  ;;  %v1955_v57 = vcvt.s32.f32 %v607_v55  ;;  %v593_v59 = vshra.s32 %v1951_v53, 16 }
 0x1a6   :  { %v1959_v58 = vsel %vm459_vm11, %v1879_v21, 128  ;;  %v437_v60 = vpop.xlane.xlu0 %436 }
 0x1a7   :  { %vm458_vm12 = vcmp.eq.f32.partialorder %v1862_v3, %v437_v60  ;;  %610 = vmin.xlane.f32.xlu1 %v1955_v57  ;;  %v1963_v61 = vcvt.s32.f32 %v593_v59  ;;  %v635_v63 = vshra.s32 %v1959_v58, 16 }
 0x1a8   :  { %v1967_v62 = vsel %vm458_vm12, %v1879_v21, 128  ;;  %v443_v0 = vpop.xlane.xlu1 %442 }
 0x1a9   :  { %vm461_vm13 = vcmp.eq.f32.partialorder %v1866_v9, %v443_v0  ;;  %596 = vmin.xlane.f32.xlu0 %v1963_v61  ;;  %v1971_v1 = vcvt.s32.f32 %v635_v63  ;;  %v621_v2 = vshra.s32 %v1967_v62, 16 }
 0x1aa   :  { %v1975_v3 = vsel %vm461_vm13, %v1879_v21, 128  ;;  %v441_v4 = vpop.xlane.xlu0 %440 }
 0x1ab   :  { %vm460_vm14 = vcmp.eq.f32.partialorder %v1870_v13, %v441_v4  ;;  %638 = vmin.xlane.f32.xlu1 %v1971_v1  ;;  %v1979_v6 = vcvt.s32.f32 %v621_v2  ;;  %v663_v7 = vshra.s32 %v1975_v3, 16 }
 0x1ac   :  { %v1983_v8 = vsel %vm460_vm14, %v1879_v21, 128  ;;  %v447_v9 = vpop.xlane.xlu1 %446 }
 0x1ad   :  { %vm463_vm15 = vcmp.eq.f32.partialorder %v1873_v17, %v447_v9  ;;  %624 = vmin.xlane.f32.xlu0 %v1979_v6  ;;  %v1987_v10 = vcvt.s32.f32 %v663_v7  ;;  %v649_v11 = vshra.s32 %v1983_v8, 16 }
 0x1ae   :  { %v1991_v12 = vsel %vm463_vm15, %v1879_v21, 128  ;;  %v445_v13 = vpop.xlane.xlu0 %444 }
 0x1af   :  { %vm462_vm1 = vcmp.eq.f32.partialorder %v1876_v18, %v445_v13  ;;  %666 = vmin.xlane.f32.xlu1 %v1987_v10  ;;  %v1995_v14 = vcvt.s32.f32 %v649_v11  ;;  %v691_v15 = vshra.s32 %v1991_v12, 16  ;;  %v494_v18 = vand.u32 65535, %v1883_v5 }
 0x1b0   :  { %v1999_v17 = vsel %vm462_vm1, %v1879_v21, 128  ;;  %v550_v5 = vand.u32 65535, %v1911_v30 }
 0x1b1   :  { %652 = vmin.xlane.f32.xlu0 %v1995_v14  ;;  %v2002_v20 = vcvt.s32.f32 %v691_v15  ;;  %v677_v22 = vshra.s32 %v1999_v17, 16  ;;  %v496_v31 = vcvt.s32.f32 %v494_v18 }
 0x1b2   :  { %v552_v47 = vcvt.s32.f32 %v550_v5 }
 0x1b3   :  { %694 = vmin.xlane.f32.xlu1 %v2002_v20  ;;  %v2006_v23 = vcvt.s32.f32 %v677_v22 }
 0x1b5   :  { %680 = vmin.xlane.f32.xlu0 %v2006_v23 }
 0x220   :  { %v2012_v29 = vpop.xlane.xlu1 %498 }
 0x221   :  { %vm500_vm2 = vcmp.eq.f32.partialorder %v1891_v28, %v2012_v29  ;;  %v536_v28 = vand.u32 65535, %v1919_v34 }
 0x222   :  { %v2017_v25 = vpop.xlane.xlu0 %484  ;;  %v501_v36 = vsel %vm500_vm2, %v496_v31, inf }
 0x223   :  { %502 = vmin.xlane.f32.xlu1 %v501_v36  ;;  %vm486_vm3 = vcmp.eq.f32.partialorder %v1899_v19, %v2017_v25  ;;  %v578_v19 = vand.u32 65535, %v1927_v39  ;;  %v538_v51 = vcvt.s32.f32 %v536_v28  ;;  %v491_v32 = vcvt.f32.s32 %v2017_v25 }
 0x224   :  { %v2022_v26 = vpop.xlane.xlu1 %526  ;;  %v487_v16 = vsel %vm486_vm3, %v482_v37, inf  ;;  %vm929_vm3 = vcmask 7168  }
 0x225   :  { %488 = vmin.xlane.f32.xlu0 %v487_v16  ;;  %vm528_vm4 = vcmp.eq.f32.partialorder %v1907_v35, %v2022_v26  ;;  %v564_v35 = vand.u32 65535, %v1935_v44  ;;  %v580_v55 = vcvt.s32.f32 %v578_v19  ;;  %v533_v36 = vcvt.f32.s32 %v2022_v26 }
 0x226   :  { %v2027_v33 = vpop.xlane.xlu0 %512  ;;  %v529_v41 = vsel %vm528_vm4, %v524_v40, inf  ;;  %v492_v28 = vshll.u32 %v491_v32, 16 }
 0x227   :  { %530 = vmin.xlane.f32.xlu1 %v529_v41  ;;  %vm514_vm5 = vcmp.eq.f32.partialorder %v1915_v38, %v2027_v33  ;;  %v606_v38 = vand.u32 65535, %v1943_v48  ;;  %v566_v59 = vcvt.s32.f32 %v564_v35  ;;  %v534_v19 = vshll.u32 %v533_v36, 16 }
 0x228   :  { %v2032_v30 = vpop.xlane.xlu1 %554  ;;  %v515_v45 = vsel %vm514_vm5, %v510_v43, inf }
 0x229   :  { %516 = vmin.xlane.f32.xlu0 %v515_v45  ;;  %vm556_vm6 = vcmp.eq.f32.partialorder %v1923_v42, %v2032_v30  ;;  %v592_v42 = vand.u32 65535, %v1951_v53  ;;  %v608_v63 = vcvt.s32.f32 %v606_v38 }
 0x22a   :  { %v2037_v34 = vpop.xlane.xlu0 %540  ;;  %v557_v49 = vsel %vm556_vm6, %v552_v47, inf  ;;  %v1538_v47 = vmov 0.0  }
 0x22b   :  { %558 = vmin.xlane.f32.xlu1 %v557_v49  ;;  %vm542_vm7 = vcmp.eq.f32.partialorder %v1931_v46, %v2037_v34  ;;  %v634_v46 = vand.u32 65535, %v1959_v58  ;;  %v594_v2 = vcvt.s32.f32 %v592_v42  ;;  %v547_v49 = vcvt.f32.s32 %v2037_v34 }
 0x22c   :  { %v2042_v39 = vpop.xlane.xlu1 %582  ;;  %v543_v52 = vsel %vm542_vm7, %v538_v51, inf }
 0x22d   :  { %544 = vmin.xlane.f32.xlu0 %v543_v52  ;;  %vm584_vm8 = vcmp.eq.f32.partialorder %v1939_v50, %v2042_v39  ;;  %v620_v50 = vand.u32 65535, %v1967_v62  ;;  %v636_v7 = vcvt.s32.f32 %v634_v46  ;;  %v589_v52 = vcvt.f32.s32 %v2042_v39 }
 0x22e   :  { %v2047_v44 = vpop.xlane.xlu0 %568  ;;  %v585_v56 = vsel %vm584_vm8, %v580_v55, inf }
 0x22f   :  { %586 = vmin.xlane.f32.xlu1 %v585_v56  ;;  %vm570_vm9 = vcmp.eq.f32.partialorder %v1947_v54, %v2047_v44  ;;  %v662_v54 = vand.u32 65535, %v1975_v3  ;;  %v622_v11 = vcvt.s32.f32 %v620_v50  ;;  %v1539_v56 = vmov 1.0  }
 0x230   :  { %v2052_v48 = vpop.xlane.xlu1 %610  ;;  %v571_v60 = vsel %vm570_vm9, %v566_v59, inf  ;;  %v575_v39 = vcvt.f32.s32 %v2047_v44  ;;  %v548_v50 = vshll.u32 %v547_v49, 16 }
 0x231   :  { %572 = vmin.xlane.f32.xlu0 %v571_v60  ;;  %vm612_vm10 = vcmp.eq.f32.partialorder %v1955_v57, %v2052_v48  ;;  %v648_v57 = vand.u32 65535, %v1983_v8  ;;  %v664_v15 = vcvt.s32.f32 %v662_v54  ;;  %v590_v54 = vshll.u32 %v589_v52, 16 }
 0x232   :  { %v2057_v53 = vpop.xlane.xlu0 %596  ;;  %v613_v0 = vsel %vm612_vm10, %v608_v63, inf }
 0x233   :  { %614 = vmin.xlane.f32.xlu1 %v613_v0  ;;  %vm598_vm11 = vcmp.eq.f32.partialorder %v1963_v61, %v2057_v53  ;;  %v690_v61 = vand.u32 65535, %v1991_v12  ;;  %v650_v18 = vcvt.s32.f32 %v648_v57 }
 0x234   :  { %v2062_v58 = vpop.xlane.xlu1 %638  ;;  %v599_v4 = vsel %vm598_vm11, %v594_v2, inf }
 0x235   :  { %600 = vmin.xlane.f32.xlu0 %v599_v4  ;;  %vm640_vm12 = vcmp.eq.f32.partialorder %v1971_v1, %v2062_v58  ;;  %v676_v1 = vand.u32 65535, %v1999_v17  ;;  %v692_v24 = vcvt.s32.f32 %v690_v61  ;;  %v617_v4 = vcvt.f32.s32 %v2052_v48 }
 0x236   :  { %v2067_v62 = vpop.xlane.xlu0 %624  ;;  %v641_v9 = vsel %vm640_vm12, %v636_v7, inf  ;;  %v576_v48 = vshll.u32 %v575_v39, 16  ;;  %v603_v61 = vcvt.f32.s32 %v2057_v53  ;;  %v645_v53 = vcvt.f32.s32 %v2062_v58 }
 0x237   :  { %642 = vmin.xlane.f32.xlu1 %v641_v9  ;;  %vm626_vm13 = vcmp.eq.f32.partialorder %v1979_v6, %v2067_v62  ;;  %v678_v17 = vcvt.s32.f32 %v676_v1 }
 0x238   :  { %v2072_v3 = vpop.xlane.xlu1 %666  ;;  %v627_v13 = vsel %vm626_vm13, %v622_v11, inf  ;;  %v604_v58 = vshll.u32 %v603_v61, 16 }
 0x239   :  { %628 = vmin.xlane.f32.xlu0 %v627_v13  ;;  %vm668_vm14 = vcmp.eq.f32.partialorder %v1987_v10, %v2072_v3 }
 0x23a   :  { %v2077_v8 = vpop.xlane.xlu0 %652  ;;  %v669_v22 = vsel %vm668_vm14, %v664_v15, inf }
 0x23b   :  { %670 = vmin.xlane.f32.xlu1 %v669_v22  ;;  %vm654_vm15 = vcmp.eq.f32.partialorder %v1995_v14, %v2077_v8  ;;  %v505_v14 = vcvt.f32.s32 %v2012_v29 }
 0x23c   :  { %v2081_v6 = vpop.xlane.xlu1 %694  ;;  %v655_v12 = vsel %vm654_vm15, %v650_v18, inf }
 0x23d   :  { %656 = vmin.xlane.f32.xlu0 %v655_v12  ;;  %vm696_vm1 = vcmp.eq.f32.partialorder %v2002_v20, %v2081_v6  ;;  %v506_v5 = vshll.u32 %v505_v14, 16  ;;  %v519_v20 = vcvt.f32.s32 %v2027_v33 }
 0x23e   :  { %v2085_v27 = vpop.xlane.xlu0 %680  ;;  %v697_v10 = vsel %vm696_vm1, %v692_v24, inf  ;;  %v618_v24 = vshll.u32 %v617_v4, 16 }
 0x23f   :  { %698 = vmin.xlane.f32.xlu1 %v697_v10  ;;  %vm682_vm2 = vcmp.eq.f32.partialorder %v2006_v23, %v2085_v27  ;;  %v561_v23 = vcvt.f32.s32 %v2032_v30  ;;  %v520_v26 = vshll.u32 %v519_v20, 16 }
 0x240   :  { %v683_v31 = vsel %vm682_vm2, %v678_v17, inf }
 0x241   :  { %684 = vmin.xlane.f32.xlu0 %v683_v31  ;;  %v562_v38 = vshll.u32 %v561_v23, 16 }
 0x2ac   :  { %v503_v37 = vpop.xlane.xlu1 %502 }
 0x2ad   :  { %v504_v16 = vcvt.f32.s32 %v503_v37  ;;  %v631_v37 = vcvt.f32.s32 %v2067_v62 }
 0x2ae   :  { %v489_v40 = vpop.xlane.xlu0 %488 }
 0x2af   :  { %v507_v41 = vadd.s32 %v506_v5, %v504_v16  ;;  %v490_v43 = vcvt.f32.s32 %v489_v40 }
 0x2b0   :  { %v531_v45 = vpop.xlane.xlu1 %530 }
 0x2b1   :  { %931 = vst.msk [vmem:[%s2383_s5 + $0x8] sm:$0xff] %vm929_vm3, %v507_v41  ;;  %v532_v29 = vcvt.f32.s32 %v531_v45  ;;  %v493_v25 = vadd.s32 %v492_v28, %v490_v43  ;;  %vm705_vm4 = vcmp.eq.s32.totalorder %v1879_v21, %v507_v41  ;;  %v646_v41 = vshll.u32 %v645_v53, 16 }
 0x2b2   :  { %v517_v33 = vpop.xlane.xlu0 %516  ;;  %v1242_v35 = vsel %vm705_vm4, 1.0, %v1538_v47  ;;  %v673_v43 = vcvt.f32.s32 %v2072_v3  ;;  %v632_v3 = vshll.u32 %v631_v37, 16 }
 0x2b3   :  { %v535_v30 = vadd.s32 %v534_v19, %v532_v29  ;;  %v518_v51 = vcvt.f32.s32 %v517_v33  ;;  %vm704_vm5 = vcmp.eq.s32.totalorder %v1879_v21, %v493_v25  ;;  %914 = vst [vmem:[#allocation2 + $0x8] sm:$0xff] %v1242_v35  ;;  %930 = vst.msk [vmem:[%s2383_s5] sm:$0xff] %vm929_vm3, %v493_v25  ;;  %v659_v33 = vcvt.f32.s32 %v2077_v8 }
 0x2b4   :  { %v559_v55 = vpop.xlane.xlu1 %558  ;;  %v1241_v42 = vsel %vm704_vm5, 1.0, %v1538_v47  ;;  %1425 = vmatprep.mubr.msk.f32.mxu1 %vm704_vm5, %v1539_v56  ;;  %v674_v52 = vshll.u32 %v673_v43, 16 }
 0x2b5   :  { %933 = vst.msk [vmem:[%s2383_s5 + $0x18] sm:$0xff] %vm929_vm3, %v535_v30  ;;  %v521_v34 = vadd.s32 %v520_v26, %v518_v51  ;;  %v560_v59 = vcvt.f32.s32 %v559_v55  ;;  %913 = vst [vmem:[#allocation2] sm:$0xff] %v1241_v42  ;;  %v1135_v46 = vadd.f32 %v1242_v35, %v1241_v42  ;;  %1426 = vmatmul.mubr.msk.f32.vlgmr.msra.gmra.mxu1 %vm705_vm4, %v1539_v56  ;;  %v701_v55 = vcvt.f32.s32 %v2081_v6 }
 0x2b6   :  { %vm707_vm6 = vcmp.eq.s32.totalorder %v1879_v21, %v535_v30  ;;  %v545_v60 = vpop.xlane.xlu0 %544  ;;  %v660_v6 = vshll.u32 %v659_v33, 16  ;;  %v1460_v33 = vld [vmem:[%s2378_s0 + $0x18] sm:$0xff] }
 0x2b7   :  { %v1244_v63 = vsel %vm707_vm6, 1.0, %v1538_v47  ;;  %932 = vst.msk [vmem:[%s2383_s5 + $0x10] sm:$0xff] %vm929_vm3, %v521_v34  ;;  %v563_v0 = vadd.s32 %v562_v38, %v560_v59  ;;  %v546_v2 = vcvt.f32.s32 %v545_v60  ;;  %vm706_vm7 = vcmp.eq.s32.totalorder %v1879_v21, %v521_v34 }
 0x2b8   :  { %916 = vst [vmem:[#allocation2 + $0x18] sm:$0xff] %v1244_v63  ;;  %v587_v44 = vpop.xlane.xlu1 %586  ;;  %v1243_v7 = vsel %vm706_vm7, 1.0, %v1538_v47  ;;  %1428 = vmatprep.mubr.msk.f32.mxu1 %vm706_vm7, %v1539_v56  ;;  %v1122_v13 = vmul.f32 0.0, %v1244_v63  ;;  %v687_v63 = vcvt.f32.s32 %v2085_v27 }
 0x2b9   :  { %935 = vst.msk [vmem:[%s2383_s5 + $0x28] sm:$0xff] %vm929_vm3, %v563_v0  ;;  %v549_v57 = vadd.s32 %v548_v50, %v546_v2  ;;  %v588_v9 = vcvt.f32.s32 %v587_v44  ;;  %915 = vst [vmem:[#allocation2 + $0x10] sm:$0xff] %v1243_v7  ;;  %v1121_v11 = vmul.f32 0.0, %v1243_v7  ;;  %1429 = vmatmul.mubr.msk.f32.gmra.mxu1 %vm707_vm6, %v1539_v56  ;;  %vm709_vm8 = vcmp.eq.s32.totalorder %v1879_v21, %v563_v0 }
 0x2ba   :  { %v573_v15 = vpop.xlane.xlu0 %572  ;;  %v1246_v1 = vsel %vm709_vm8, 1.0, %v1538_v47  ;;  %v702_v44 = vshll.u32 %v701_v55, 16 }
 0x2bb   :  { %934 = vst.msk [vmem:[%s2383_s5 + $0x20] sm:$0xff] %vm929_vm3, %v549_v57  ;;  %v591_v22 = vadd.s32 %v590_v54, %v588_v9  ;;  %v1136_v18 = vadd.f32 %v1135_v46, %v1121_v11  ;;  %v574_v12 = vcvt.f32.s32 %v573_v15  ;;  %vm708_vm9 = vcmp.eq.s32.totalorder %v1879_v21, %v549_v57  ;;  %918 = vst [vmem:[#allocation2 + $0x28] sm:$0xff] %v1246_v1 }
 0x2bc   :  { %v615_v10 = vpop.xlane.xlu1 %614  ;;  %v1245_v17 = vsel %vm708_vm9, 1.0, %v1538_v47  ;;  %1431 = vmatprep.mubr.msk.f32.mxu1 %vm708_vm9, %v1539_v56  ;;  %v1124_v5 = vmul.f32 0.0, %v1246_v1 }
 0x2bd   :  { %937 = vst.msk [vmem:[%s2383_s5 + $0x38] sm:$0xff] %vm929_vm3, %v591_v22  ;;  %v1137_v31 = vadd.f32 %v1136_v18, %v1122_v13  ;;  %v577_v14 = vadd.s32 %v576_v48, %v574_v12  ;;  %v616_v32 = vcvt.f32.s32 %v615_v10  ;;  %917 = vst [vmem:[#allocation2 + $0x20] sm:$0xff] %v1245_v17  ;;  %v1123_v36 = vmul.f32 0.0, %v1245_v17  ;;  %1432 = vmatmul.mubr.msk.f32.gmra.mxu1 %vm709_vm8, %v1539_v56 }
 0x2be   :  { %v601_v16 = vpop.xlane.xlu0 %600  ;;  %vm711_vm10 = vcmp.eq.s32.totalorder %v1879_v21, %v591_v22  ;;  %v688_v13 = vshll.u32 %v687_v63, 16 }
 0x2bf   :  { %936 = vst.msk [vmem:[%s2383_s5 + $0x30] sm:$0xff] %vm929_vm3, %v577_v14  ;;  %v619_v20 = vadd.s32 %v618_v24, %v616_v32  ;;  %v1138_v40 = vadd.f32 %v1137_v31, %v1123_v36  ;;  %v602_v28 = vcvt.f32.s32 %v601_v16  ;;  %vm710_vm11 = vcmp.eq.s32.totalorder %v1879_v21, %v577_v14 }
 0x2c0   :  { %v643_v19 = vpop.xlane.xlu1 %642  ;;  %v1247_v62 = vsel %vm710_vm11, 1.0, %v1538_v47  ;;  %1434 = vmatprep.mubr.msk.f32.mxu1 %vm710_vm11, %v1539_v56  ;;  %v1248_v23 = vsel %vm711_vm10, 1.0, %v1538_v47 }
 0x2c1   :  { %939 = vst.msk [vmem:[%s2383_s5 + $0x48] sm:$0xff] %vm929_vm3, %v619_v20  ;;  %v1139_v45 = vadd.f32 %v1138_v40, %v1124_v5  ;;  %v605_v29 = vadd.s32 %v604_v58, %v602_v28  ;;  %v644_v25 = vcvt.f32.s32 %v643_v19  ;;  %919 = vst [vmem:[#allocation2 + $0x30] sm:$0xff] %v1247_v62  ;;  %v1125_v26 = vmul.f32 0.0, %v1247_v62  ;;  %1435 = vmatmul.mubr.msk.f32.gmra.mxu1 %vm711_vm10, %v1539_v56 }
 0x2c2   :  { %920 = vst [vmem:[#allocation2 + $0x38] sm:$0xff] %v1248_v23  ;;  %v1126_v35 = vmul.f32 0.0, %v1248_v23  ;;  %v629_v49 = vpop.xlane.xlu0 %628  ;;  %vm713_vm12 = vcmp.eq.s32.totalorder %v1879_v21, %v619_v20 }
 0x2c3   :  { %938 = vst.msk [vmem:[%s2383_s5 + $0x40] sm:$0xff] %vm929_vm3, %v605_v29  ;;  %v647_v30 = vadd.s32 %v646_v41, %v644_v25  ;;  %v1140_v51 = vadd.f32 %v1139_v45, %v1125_v26  ;;  %v630_v38 = vcvt.f32.s32 %v629_v49  ;;  %vm712_vm13 = vcmp.eq.s32.totalorder %v1879_v21, %v605_v29  ;;  %v1459_v29 = vld [vmem:[%s2378_s0] sm:$0xff] }
 0x2c4   :  { %v671_v42 = vpop.xlane.xlu1 %670  ;;  %v1249_v8 = vsel %vm712_vm13, 1.0, %v1538_v47  ;;  %1437 = vmatprep.mubr.msk.f32.mxu1 %vm712_vm13, %v1539_v56  ;;  %v1250_v34 = vsel %vm713_vm12, 1.0, %v1538_v47 }
 0x2c5   :  { %941 = vst.msk [vmem:[%s2383_s5 + $0x58] sm:$0xff] %vm929_vm3, %v647_v30  ;;  %v1141_v59 = vadd.f32 %v1140_v51, %v1126_v35  ;;  %v633_v46 = vadd.s32 %v632_v3, %v630_v38  ;;  %v672_v39 = vcvt.f32.s32 %v671_v42  ;;  %921 = vst [vmem:[#allocation2 + $0x40] sm:$0xff] %v1249_v8  ;;  %v1127_v60 = vmul.f32 0.0, %v1249_v8  ;;  %1438 = vmatmul.mubr.msk.f32.gmra.mxu1 %vm713_vm12, %v1539_v56  ;;  %v1461_v38 = vld [vmem:[%s2378_s0 + $0x10] sm:$0xff] }
 0x2c6   :  { %922 = vst [vmem:[#allocation2 + $0x48] sm:$0xff] %v1250_v34  ;;  %v1128_v50 = vmul.f32 0.0, %v1250_v34  ;;  %v657_v0 = vpop.xlane.xlu0 %656  ;;  %vm715_vm14 = vcmp.eq.s32.totalorder %v1879_v21, %v647_v30  ;;  %v1462_v34 = vld [vmem:[%s2378_s0 + $0x28] sm:$0xff] }
 0x2c7   :  { %940 = vst.msk [vmem:[%s2383_s5 + $0x50] sm:$0xff] %vm929_vm3, %v633_v46  ;;  %v675_v2 = vadd.s32 %v674_v52, %v672_v39  ;;  %v1142_v54 = vadd.f32 %v1141_v59, %v1127_v60  ;;  %v658_v4 = vcvt.f32.s32 %v657_v0  ;;  %vm714_vm15 = vcmp.eq.s32.totalorder %v1879_v21, %v633_v46 }
 0x2c8   :  { %v699_v7 = vpop.xlane.xlu1 %698  ;;  %v1251_v57 = vsel %vm714_vm15, 1.0, %v1538_v47  ;;  %1440 = vmatprep.mubr.msk.f32.mxu1 %vm714_vm15, %v1539_v56  ;;  %v1252_v27 = vsel %vm715_vm14, 1.0, %v1538_v47 }
 0x2c9   :  { %943 = vst.msk [vmem:[%s2383_s5 + $0x68] sm:$0xff] %vm929_vm3, %v675_v2  ;;  %v1143_v9 = vadd.f32 %v1142_v54, %v1128_v50  ;;  %v661_v11 = vadd.s32 %v660_v6, %v658_v4  ;;  %v700_v48 = vcvt.f32.s32 %v699_v7  ;;  %923 = vst [vmem:[#allocation2 + $0x50] sm:$0xff] %v1251_v57  ;;  %v1129_v61 = vmul.f32 0.0, %v1251_v57  ;;  %1441 = vmatmul.mubr.msk.f32.gmra.mxu1 %vm715_vm14, %v1539_v56  ;;  %v1463_v50 = vld [vmem:[%s2378_s0 + $0x20] sm:$0xff]  ;;  %v1464_v7 = vld [vmem:[%s2378_s0 + $0x38] sm:$0xff] }
 0x2ca   :  { %924 = vst [vmem:[#allocation2 + $0x58] sm:$0xff] %v1252_v27  ;;  %v1130_v15 = vmul.f32 0.0, %v1252_v27  ;;  %v685_v1 = vpop.xlane.xlu0 %684  ;;  %vm717_vm1 = vcmp.eq.s32.totalorder %v1879_v21, %v675_v2 }
 0x2cb   :  { %942 = vst.msk [vmem:[%s2383_s5 + $0x60] sm:$0xff] %vm929_vm3, %v661_v11  ;;  %v703_v22 = vadd.s32 %v702_v44, %v700_v48  ;;  %v1144_v18 = vadd.f32 %v1143_v9, %v1129_v61  ;;  %v686_v12 = vcvt.f32.s32 %v685_v1  ;;  %vm716_vm2 = vcmp.eq.s32.totalorder %v1879_v21, %v661_v11 }
 0x2cc   :  { %v1253_v24 = vsel %vm716_vm2, 1.0, %v1538_v47  ;;  %1443 = vmatprep.mubr.msk.f32.mxu1 %vm716_vm2, %v1539_v56  ;;  %v1254_v53 = vsel %vm717_vm1, 1.0, %v1538_v47 }
 0x2cd   :  { %945 = vst.msk [vmem:[%s2383_s5 + $0x78] sm:$0xff] %vm929_vm3, %v703_v22  ;;  %v1145_v10 = vadd.f32 %v1144_v18, %v1130_v15  ;;  %v689_v17 = vadd.s32 %v688_v13, %v686_v12  ;;  %925 = vst [vmem:[#allocation2 + $0x60] sm:$0xff] %v1253_v24  ;;  %v1131_v31 = vmul.f32 0.0, %v1253_v24  ;;  %1444 = vmatmul.mubr.msk.f32.gmra.mxu1 %vm717_vm1, %v1539_v56  ;;  %v1132_v32 = vmul.f32 0.0, %v1254_v53  ;;  %v1465_v15 = vld [vmem:[%s2378_s0 + $0x30] sm:$0xff] }
 0x2ce   :  { %926 = vst [vmem:[#allocation2 + $0x68] sm:$0xff] %v1254_v53  ;;  %vm719_vm4 = vcmp.eq.s32.totalorder %v1879_v21, %v703_v22  ;;  %v1466_v53 = vld [vmem:[%s2378_s0 + $0x48] sm:$0xff] }
 0x2cf   :  { %944 = vst.msk [vmem:[%s2383_s5 + $0x70] sm:$0xff] %vm929_vm3, %v689_v17  ;;  %v1146_v14 = vadd.f32 %v1145_v10, %v1131_v31  ;;  %vm718_vm5 = vcmp.eq.s32.totalorder %v1879_v21, %v689_v17  ;;  %v1256_v36 = vsel %vm719_vm4, 1.0, %v1538_v47 }
 0x2d0   :  { %v1255_v58 = vsel %vm718_vm5, 1.0, %v1538_v47  ;;  %1446 = vmatprep.mubr.msk.f32.mxu1 %vm718_vm5, %v1539_v56  ;;  %928 = vst [vmem:[#allocation2 + $0x78] sm:$0xff] %v1256_v36  ;;  %v1134_v20 = vmul.f32 0.0, %v1256_v36 }
 0x2d1   :  { %v1147_v37 = vadd.f32 %v1146_v14, %v1132_v32  ;;  %927 = vst [vmem:[#allocation2 + $0x70] sm:$0xff] %v1255_v58  ;;  %v1133_v5 = vmul.f32 0.0, %v1255_v58  ;;  %1447 = vmatmul.mubr.msk.f32.gmra.mxu1 %vm719_vm4, %v1539_v56  ;;  %v1458_v56 = vld [vmem:[%s2378_s0 + $0x8] sm:$0xff] }
 0x2d3   :  { %v1148_v16 = vadd.f32 %v1147_v37, %v1133_v5  ;;  %v1467_v37 = vld [vmem:[%s2378_s0 + $0x40] sm:$0xff] }
 0x2d5   :  { %v1149_v40 = vadd.f32 %v1148_v16, %v1134_v20 }
 0x2d7   :  { %v1150_v28 = vrot.slane %v1149_v40, 4 }
 0x2d9   :  { %v1151_v41 = vadd.f32 %v1150_v28, %v1149_v40 }
 0x2db   :  { %v1152_v43 = vrot.slane %v1151_v41, 2 }
 0x2dd   :  { %v1153_v19 = vadd.f32 %v1152_v43, %v1151_v41  ;;  %v1468_v41 = vld [vmem:[%s2378_s0 + $0x58] sm:$0xff] }
 0x2df   :  { %v1154_v21 = vrot.slane %v1153_v19, 1 }
 0x2e1   :  { %v1155_v62 = vadd.f32 %v1154_v21, %v1153_v19 }
 0x2e3   :  { %1156 = vst [vmem:[#allocation6] sm:$0x1] %v1155_v62 }
 0x375   :  { %v1427_v23 = vpop.f32.mrf.mxu1 }
 0x376   :  { %898 = vst.msk [vmem:[%s2381_s3 + $0x8] sm:$0xff] %vm70_vm0, %v1427_v23  ;;  %v1030_v45 = vsub.f32 %v1427_v23, %v1458_v56 }
 0x377   :  { %v818_v47 = vpop.f32.mrf.mxu1 }
 0x378   :  { %897 = vst.msk [vmem:[%s2381_s3] sm:$0xff] %vm70_vm0, %v818_v47  ;;  %v1029_v25 = vsub.f32 %v818_v47, %v1459_v29  ;;  %v1062_v30 = vmul.f32 %v1030_v45, %v1030_v45  ;;  %v1469_v45 = vld [vmem:[%s2378_s0 + $0x50] sm:$0xff] }
 0x379   :  { %v1430_v26 = vpop.f32.mrf.mxu1 }
 0x37a   :  { %v1061_v3 = vmul.f32 %v1029_v25, %v1029_v25  ;;  %900 = vst.msk [vmem:[%s2381_s3 + $0x18] sm:$0xff] %vm70_vm0, %v1430_v26  ;;  %v1032_v35 = vsub.f32 %v1430_v26, %v1460_v33  ;;  %v1078_v60 = vsel %vm70_vm0, %v1062_v30, 0.0 }
 0x37b   :  { %v828_v49 = vpop.f32.mrf.mxu1 }
 0x37c   :  { %v1048_v51 = vmul.f32 0.0, %v1032_v35  ;;  %899 = vst.msk [vmem:[%s2381_s3 + $0x10] sm:$0xff] %vm70_vm0, %v828_v49  ;;  %v1031_v52 = vsub.f32 %v828_v49, %v1461_v38  ;;  %v1077_v42 = vsel %vm70_vm0, %v1061_v3, 0.0  ;;  %v1470_v35 = vld [vmem:[%s2378_s0 + $0x68] sm:$0xff] }
 0x37d   :  { %v1433_v55 = vpop.f32.mrf.mxu1  ;;  %v1079_v2 = vadd.f32 %v1078_v60, %v1077_v42 }
 0x37e   :  { %v1047_v8 = vmul.f32 0.0, %v1031_v52  ;;  %902 = vst.msk [vmem:[%s2381_s3 + $0x28] sm:$0xff] %vm70_vm0, %v1433_v55  ;;  %v1034_v59 = vsub.f32 %v1433_v55, %v1462_v34  ;;  %v1064_v46 = vmul.f32 %v1048_v51, %v1048_v51 }
 0x37f   :  { %v838_v39 = vpop.f32.mrf.mxu1 }
 0x380   :  { %v1063_v6 = vmul.f32 %v1047_v8, %v1047_v8  ;;  %v1050_v63 = vmul.f32 0.0, %v1034_v59  ;;  %901 = vst.msk [vmem:[%s2381_s3 + $0x20] sm:$0xff] %vm70_vm0, %v838_v39  ;;  %v1033_v0 = vsub.f32 %v838_v39, %v1463_v50  ;;  %v1082_v27 = vsel %vm70_vm0, %v1064_v46, 0.0  ;;  %v1471_v8 = vld [vmem:[%s2378_s0 + $0x60] sm:$0xff] }
 0x381   :  { %v1436_v54 = vpop.f32.mrf.mxu1 }
 0x382   :  { %v1080_v4 = vsel %vm70_vm0, %v1063_v6, 0.0  ;;  %v1049_v44 = vmul.f32 0.0, %v1033_v0  ;;  %904 = vst.msk [vmem:[%s2381_s3 + $0x38] sm:$0xff] %vm70_vm0, %v1436_v54  ;;  %v1036_v57 = vsub.f32 %v1436_v54, %v1464_v7  ;;  %v1066_v48 = vmul.f32 %v1050_v63, %v1050_v63  ;;  %v1472_v6 = vld [vmem:[%s2378_s0 + $0x78] sm:$0xff]  ;;  %v1473_v7 = vld [vmem:[%s2378_s0 + $0x70] sm:$0xff] }
 0x383   :  { %v1081_v9 = vadd.f32 %v1080_v4, %v1079_v2  ;;  %v848_v11 = vpop.f32.mrf.mxu1 }
 0x384   :  { %v1065_v61 = vmul.f32 %v1049_v44, %v1049_v44  ;;  %v1052_v13 = vmul.f32 0.0, %v1036_v57  ;;  %903 = vst.msk [vmem:[%s2381_s3 + $0x30] sm:$0xff] %vm70_vm0, %v848_v11  ;;  %v1035_v1 = vsub.f32 %v848_v11, %v1465_v15  ;;  %v1086_v32 = vsel %vm70_vm0, %v1066_v48, 0.0 }
 0x385   :  { %v1083_v22 = vadd.f32 %v1082_v27, %v1081_v9  ;;  %v1439_v18 = vpop.f32.mrf.mxu1 }
 0x386   :  { %v1084_v12 = vsel %vm70_vm0, %v1065_v61, 0.0  ;;  %v1051_v24 = vmul.f32 0.0, %v1035_v1  ;;  %906 = vst.msk [vmem:[%s2381_s3 + $0x48] sm:$0xff] %vm70_vm0, %v1439_v18  ;;  %v1038_v10 = vsub.f32 %v1439_v18, %v1466_v53  ;;  %v1068_v31 = vmul.f32 %v1052_v13, %v1052_v13 }
 0x387   :  { %v1085_v17 = vadd.f32 %v1084_v12, %v1083_v22  ;;  %v858_v14 = vpop.f32.mrf.mxu1 }
 0x388   :  { %v1067_v36 = vmul.f32 %v1051_v24, %v1051_v24  ;;  %v1054_v58 = vmul.f32 0.0, %v1038_v10  ;;  %905 = vst.msk [vmem:[%s2381_s3 + $0x40] sm:$0xff] %vm70_vm0, %v858_v14  ;;  %v1037_v5 = vsub.f32 %v858_v14, %v1467_v37  ;;  %v1090_v19 = vsel %vm70_vm0, %v1068_v31, 0.0 }
 0x389   :  { %v1087_v16 = vadd.f32 %v1086_v32, %v1085_v17  ;;  %v1442_v20 = vpop.f32.mrf.mxu1 }
 0x38a   :  { %v1088_v40 = vsel %vm70_vm0, %v1067_v36, 0.0  ;;  %v1053_v28 = vmul.f32 0.0, %v1037_v5  ;;  %908 = vst.msk [vmem:[%s2381_s3 + $0x58] sm:$0xff] %vm70_vm0, %v1442_v20  ;;  %v1040_v43 = vsub.f32 %v1442_v20, %v1468_v41  ;;  %v1070_v23 = vmul.f32 %v1054_v58, %v1054_v58 }
 0x38b   :  { %v1089_v21 = vadd.f32 %v1088_v40, %v1087_v16  ;;  %v868_v62 = vpop.f32.mrf.mxu1 }
 0x38c   :  { %v1069_v47 = vmul.f32 %v1053_v28, %v1053_v28  ;;  %v1056_v56 = vmul.f32 0.0, %v1040_v43  ;;  %907 = vst.msk [vmem:[%s2381_s3 + $0x50] sm:$0xff] %vm70_vm0, %v868_v62  ;;  %v1039_v29 = vsub.f32 %v868_v62, %v1469_v45  ;;  %v1094_v52 = vsel %vm70_vm0, %v1070_v23, 0.0 }
 0x38d   :  { %v1091_v25 = vadd.f32 %v1090_v19, %v1089_v21  ;;  %v1445_v26 = vpop.f32.mrf.mxu1 }
 0x38e   :  { %v1092_v3 = vsel %vm70_vm0, %v1069_v47, 0.0  ;;  %v1055_v33 = vmul.f32 0.0, %v1039_v29  ;;  %910 = vst.msk [vmem:[%s2381_s3 + $0x68] sm:$0xff] %vm70_vm0, %v1445_v26  ;;  %v1042_v49 = vsub.f32 %v1445_v26, %v1470_v35  ;;  %v1072_v51 = vmul.f32 %v1056_v56, %v1056_v56 }
 0x38f   :  { %v1093_v30 = vadd.f32 %v1092_v3, %v1091_v25  ;;  %v878_v38 = vpop.f32.mrf.mxu1 }
 0x390   :  { %v1071_v55 = vmul.f32 %v1055_v33, %v1055_v33  ;;  %v1058_v42 = vmul.f32 0.0, %v1042_v49  ;;  %909 = vst.msk [vmem:[%s2381_s3 + $0x60] sm:$0xff] %vm70_vm0, %v878_v38  ;;  %v1041_v34 = vsub.f32 %v878_v38, %v1471_v8  ;;  %v1098_v50 = vsel %vm70_vm0, %v1072_v51, 0.0 }
 0x391   :  { %v1095_v59 = vadd.f32 %v1094_v52, %v1093_v30  ;;  %v1448_v46 = vpop.f32.mrf.mxu1 }
 0x392   :  { %v1096_v39 = vsel %vm70_vm0, %v1071_v55, 0.0  ;;  %v1057_v60 = vmul.f32 0.0, %v1041_v34  ;;  %912 = vst.msk [vmem:[%s2381_s3 + $0x78] sm:$0xff] %vm70_vm0, %v1448_v46  ;;  %v1044_v63 = vsub.f32 %v1448_v46, %v1472_v6  ;;  %v1074_v54 = vmul.f32 %v1058_v42, %v1058_v42 }
 0x393   :  { %v1097_v0 = vadd.f32 %v1096_v39, %v1095_v59  ;;  %v888_v2 = vpop.f32.mrf.mxu1 }
 0x394   :  { %v1073_v4 = vmul.f32 %v1057_v60, %v1057_v60  ;;  %v1060_v44 = vmul.f32 0.0, %v1044_v63  ;;  %911 = vst.msk [vmem:[%s2381_s3 + $0x70] sm:$0xff] %vm70_vm0, %v888_v2  ;;  %v1043_v57 = vsub.f32 %v888_v2, %v1473_v7  ;;  %v1102_v61 = vsel %vm70_vm0, %v1074_v54, 0.0  ;;  %s1540_s3 = smov [#allocation2]  }
 0x395   :  { %v1099_v27 = vadd.f32 %v1098_v50, %v1097_v0  ;;  %s1164_s0 = sshll.u32 %s1540_s3, 4  ;;  %s1165_s0 = int_to_ptr.vmem [resolvable:$true] %s1164_s0 }
 0x396   :  { %v1100_v9 = vsel %vm70_vm0, %v1073_v4, 0.0  ;;  %v1059_v11 = vmul.f32 0.0, %v1043_v57  ;;  %v1076_v13 = vmul.f32 %v1060_v44, %v1060_v44  ;;  %s1474_s14 = scalar_lea.vmem %s1165_s0, 2048  ;;  %p1479_p1 = scmp.lt.s32.totalorder %s1165_s0, %s1165_s0 }
 0x397   :  { %v1101_v48 = vadd.f32 %v1100_v9, %v1099_v27  ;;  %p1475_p0 = scmp.ne.s32.totalorder %s1165_s0, %s1474_s14  ;;  %p1480_p2 = scmp.lt.s32.totalorder %s1474_s14, %s1474_s14 }
 0x398   :  { %v1075_v15 = vmul.f32 %v1059_v11, %v1059_v11  ;;  %v1106_v12 = vsel %vm70_vm0, %v1076_v13, 0.0 }
 0x399   :  { %v1103_v1 = vadd.f32 %v1102_v61, %v1101_v48  ;;  %p1481_p3 = por %p1480_p2, %p1479_p1 }
 0x39a   :  { %v1104_v22 = vsel %vm70_vm0, %v1075_v15, 0.0 }
 0x39b   :  { %v1105_v18 = vadd.f32 %v1104_v22, %v1103_v1  ;;  %p1482_p4 = pnand %p1481_p3, %p1475_p0 }
 0x39d   :  { %v1107_v24 = vadd.f32 %v1106_v12, %v1105_v18 }
 0x39f   :  { %1108 = vadd.xlane.f32.xlu0 %v1107_v24 }
 0x3a0   :  { %1485 = shalt.err (!%p1482_p4)
}
 0x3a1   :  { %s1541_s15 = smov 128   ;;  %s1542_s16 = smov 8  }
 0x3a2   :  { %1170 = dma.vmem_to_hbm [thread:$0]  %s1165_s0, 2048, %s2382_s4, [#allocation3], %s1541_s15, %s1541_s15, %s1542_s16  }
 0x3a3   :  { %s1543_s1 = smov [#allocation4]   ;;  %s1544_s2 = smov [#allocation6]  }
 0x3a4   :  { %s1179_s19 = sshll.u32 %s1543_s1, 4  ;;  %s1189_s20 = sshll.u32 %s1544_s2, 4  ;;  %s1180_s19 = int_to_ptr.vmem [resolvable:$true] %s1179_s19  ;;  %s1190_s20 = int_to_ptr.vmem [resolvable:$true] %s1189_s20 }
 0x3a5   :  { %s1494_s22 = scalar_lea.vmem %s1180_s19, 16  ;;  %s1498_s4 = scalar_lea.vmem %s1180_s19, 32 }
 0x3a6   :  { %p1495_p5 = scmp.ne.s32.totalorder %s1180_s19, %s1494_s22  ;;  %p1499_p6 = scmp.lt.s32.totalorder %s1180_s19, %s1180_s19 }
 0x3a7   :  { %p1500_p7 = scmp.lt.s32.totalorder %s1498_s4, %s1494_s22 }
 0x3a9   :  { %p1501_p8 = por %p1500_p7, %p1499_p6 }
 0x3ab   :  { %p1502_p9 = pnand %p1501_p8, %p1495_p5 }
 0x428   :  { %v1109_v53 = vpop.xlane.xlu0 %1108 }
 0x429   :  { %v1110_v10 = vrot.slane %v1109_v53, 4 }
 0x42b   :  { %v1111_v17 = vadd.f32 %v1110_v10, %v1109_v53 }
 0x42d   :  { %v1112_v31 = vrot.slane %v1111_v17, 2 }
 0x42f   :  { %v1113_v14 = vadd.f32 %v1112_v31, %v1111_v17 }
 0x431   :  { %v1114_v32 = vrot.slane %v1113_v14, 1 }
 0x433   :  { %v1115_v36 = vadd.f32 %v1114_v32, %v1113_v14 }
 0x435   :  { %1449 = vpush %v1115_v36 }
 0x466   :  { %s1450_s21 = spop %1449 }
 0x467   :  { %v1117_v58 = vstv %s1450_s21 }
 0x468   :  { %1118 = vst [vmem:[#allocation4] sm:$0x1] %v1117_v58 }
 0x469   :  { %1505 = shalt.err (!%p1502_p9)
}
 0x46a   :  { %1182 = dma.vmem_to_hbm [thread:$0]  %s1180_s19, 16, %s2384_s6, [#allocation5]  }
 0x46b   :  { %s1514_s25 = scalar_lea.vmem %s1190_s20, 16  ;;  %s1518_s5 = scalar_lea.vmem %s1190_s20, 32 }
 0x46c   :  { %p1515_p10 = scmp.ne.s32.totalorder %s1190_s20, %s1514_s25  ;;  %p1519_p11 = scmp.lt.s32.totalorder %s1190_s20, %s1190_s20 }
 0x46d   :  { %p1520_p12 = scmp.lt.s32.totalorder %s1518_s5, %s1514_s25 }
 0x46f   :  { %p1521_p13 = por %p1520_p12, %p1519_p11 }
 0x471   :  { %p1522_p0 = pnand %p1521_p13, %p1515_p10 }
 0x473   :  { %1525 = shalt.err (!%p1522_p0)
}
 0x474   :  { %1192 = dma.vmem_to_hbm [thread:$0]  %s1190_s20, 16, %s2385_s7, [#allocation5]  }
 0x475   :  { %1534 = dma.done.wait [#allocation3], 2048  }
 0x476   :  { %1535 = vsyncadd [#allocation3], 4294965248 }
 0x477   :  { %1536 = dma.done.wait [#allocation5], 32  }
 0x478   :  { %1537 = vsyncadd [#allocation5], 4294967264 }
 0x479   :  { %1206 = vsyncpa [#allocation3], 1 }
 0x47a   :  { %1207 = vsyncpa [#allocation5], 1 }

</bundles_post_ra>
